<compile_context>
chip_gen: v7x
topology: tpu7x:2x2x1
jax: 0.10.0
libtpu: 0.0.40
codegen_flags: <defaults>
</compile_context>

<pallas_src>
import jax
import jax.numpy as jnp
import numpy as np
from jax.experimental import pallas as pl
from jax.experimental.pallas import tpu as pltpu

# Problem sizes: Seq2Seq3(input_shape=(T_IN, F_IN), output_shape=(T_OUT, C_OUT), hidden_size=H)
B, T_IN, F_IN = 2, 8, 4
T_OUT, C_OUT = 6, 5
H = 32  # hidden_size != C_OUT, so the trailing `lin` layer exists


def _lstm_step(pre_t, h, c, whh):
    """One LSTM step. pre_t = x_t @ W_ih + b is precomputed (off the critical chain).

    PyTorch gate order: input, forget, cell(g), output.
    """
    gates = pre_t + jnp.dot(h, whh, preferred_element_type=jnp.float32)
    sig = jax.nn.sigmoid(gates)          # one full-width (B,4H) EUP dispatch
    th = jnp.tanh(gates)                 # one full-width (B,4H) EUP dispatch
    i = sig[:, 0 * H:1 * H]
    f = sig[:, 1 * H:2 * H]
    g = th[:, 2 * H:3 * H]
    o = sig[:, 3 * H:4 * H]
    c_new = f * c + i * g
    h_new = o * jnp.tanh(c_new)
    return h_new, c_new


def seq2seq3_kernel(x_ref, wih1_ref, whh1_ref, b1_ref,
                    w12_ref, b12_ref,
                    wih2_ref, whh2_ref, b2_ref,
                    wl_ref, bl_ref, out_ref,
                    hs1_ref, hs2_ref):
    wih1, whh1 = wih1_ref[...], whh1_ref[...]
    wih2, whh2 = wih2_ref[...], whh2_ref[...]

    # Hoist bias broadcasts out of the unrolled loops (JAX does not CSE broadcast_in_dim).
    b1b = jnp.broadcast_to(b1_ref[...], (B, 4 * H))
    b2b = jnp.broadcast_to(b2_ref[...], (B, 4 * H))

    # --- rnn1 input projections: independent of h, hoisted before the recurrence ---
    xw = [jnp.dot(x_ref[:, t, :], wih1, preferred_element_type=jnp.float32) + b1b
          for t in range(T_IN)]

    # --- rnn1 recurrence (return_sequence + return_state); only h @ Whh1 is sequential ---
    h = jnp.zeros((B, H), jnp.float32)
    c = jnp.zeros((B, H), jnp.float32)
    for t in range(T_IN):                              # small static trip count -> unrolled
        h, c = _lstm_step(xw[t], h, c, whh1)
        hs1_ref[:, t * H:(t + 1) * H] = h              # flatten in (T, H) row-major order

    # --- lin12: single dot, K = T_IN*H = 256 (== reshape(seq1,(B,T_IN*H)) @ W12 + b12) ---
    z = (jnp.dot(hs1_ref[...], w12_ref[...], preferred_element_type=jnp.float32)
         + b12_ref[...])

    # --- rnn2 input projections: depend only on z, hoisted off the recurrent chain ---
    zw = [jnp.dot(z[:, t * H:(t + 1) * H], wih2,
                  preferred_element_type=jnp.float32) + b2b
          for t in range(T_OUT)]

    # --- rnn2 recurrence, seeded with rnn1's final (h, c) ---
    for t in range(T_OUT):
        h, c = _lstm_step(zw[t], h, c, whh2)
        hs2_ref[:, t * H:(t + 1) * H] = h

    # --- lin: single dot, K = T_OUT*H = 192 ---
    out_ref[...] = (jnp.dot(hs2_ref[...], wl_ref[...],
                            preferred_element_type=jnp.float32) + bl_ref[...])


def seq2seq3_forward(x, p):
    # x stays batch-first (B, T_IN, F_IN): no wrapper-side transpose op.
    args = (x, p["wih1"], p["whh1"], p["b1"],
            p["w12"], p["b12"],
            p["wih2"], p["whh2"], p["b2"],
            p["wl"], p["bl"])
    vmem = pl.BlockSpec(memory_space=pltpu.MemorySpace.VMEM)

    flops = 2 * (T_IN * B * F_IN * 4 * H               # hoisted x projections
                 + (T_IN + T_OUT) * B * H * 4 * H      # recurrent h @ Whh
                 + T_OUT * B * H * 4 * H               # hoisted z projections
                 + B * (T_IN * H) * (T_OUT * H)        # lin12
                 + B * (T_OUT * H) * (T_OUT * C_OUT))  # lin
    transcendentals = (T_IN + T_OUT) * B * 9 * H
    bytes_accessed = 4 * (int(x.size) + sum(int(v.size) for v in p.values())
                          + B * T_OUT * C_OUT)

    y_flat = pl.pallas_call(
        seq2seq3_kernel,
        out_shape=jax.ShapeDtypeStruct((B, T_OUT * C_OUT), jnp.float32),
        in_specs=[vmem] * len(args),
        out_specs=vmem,
        scratch_shapes=[pltpu.VMEM((B, T_IN * H), jnp.float32),    # rnn1 outputs, flat
                        pltpu.VMEM((B, T_OUT * H), jnp.float32)],  # rnn2 outputs, flat
        cost_estimate=pl.CostEstimate(flops=flops,
                                      transcendentals=transcendentals,
                                      bytes_accessed=bytes_accessed),
    )(*args)
    return y_flat.reshape(B, T_OUT, C_OUT)


def init_params(key):
    ks = jax.random.split(key, 10)
    s = 0.1
    return {
        "wih1": s * jax.random.normal(ks[0], (F_IN, 4 * H), jnp.float32),
        "whh1": s * jax.random.normal(ks[1], (H, 4 * H), jnp.float32),
        "b1":   s * jax.random.normal(ks[2], (1, 4 * H), jnp.float32),
        "w12":  s * jax.random.normal(ks[3], (T_IN * H, T_OUT * H), jnp.float32),
        "b12":  s * jax.random.normal(ks[4], (1, T_OUT * H), jnp.float32),
        "wih2": s * jax.random.normal(ks[5], (H, 4 * H), jnp.float32),
        "whh2": s * jax.random.normal(ks[6], (H, 4 * H), jnp.float32),
        "b2":   s * jax.random.normal(ks[7], (1, 4 * H), jnp.float32),
        "wl":   s * jax.random.normal(ks[8], (T_OUT * H, T_OUT * C_OUT), jnp.float32),
        "bl":   s * jax.random.normal(ks[9], (1, T_OUT * C_OUT), jnp.float32),
    }


def reference_forward(x, p):
    # Pure-JAX reference of the same semantics (PyTorch gate order i,f,g,o).
    def lstm(xseq, wih, whh, b, h, c):
        outs = []
        for t in range(xseq.shape[1]):
            gates = xseq[:, t, :] @ wih + h @ whh + b
            i = jax.nn.sigmoid(gates[:, :H])
            f = jax.nn.sigmoid(gates[:, H:2 * H])
            g = jnp.tanh(gates[:, 2 * H:3 * H])
            o = jax.nn.sigmoid(gates[:, 3 * H:])
            c = f * c + i * g
            h = o * jnp.tanh(c)
            outs.append(h)
        return jnp.stack(outs, axis=1), h, c

    h0 = jnp.zeros((B, H), jnp.float32)
    c0 = jnp.zeros((B, H), jnp.float32)
    seq1, h1, c1 = lstm(x, p["wih1"], p["whh1"], p["b1"], h0, c0)
    z = (seq1.reshape(B, T_IN * H) @ p["w12"] + p["b12"]).reshape(B, T_OUT, H)
    seq2, _, _ = lstm(z, p["wih2"], p["whh2"], p["b2"], h1, c1)
    y = seq2.reshape(B, T_OUT * H) @ p["wl"] + p["bl"]
    return y.reshape(B, T_OUT, C_OUT)


if __name__ == "__main__":
    key = jax.random.PRNGKey(0)
    kx, kp = jax.random.split(key)
    x = jax.random.normal(kx, (B, T_IN, F_IN), jnp.float32)
    params = init_params(kp)

    out = seq2seq3_forward(x, params)
    out = jax.block_until_ready(out)

    ref = reference_forward(x, params)
    if not np.allclose(np.asarray(out), np.asarray(ref), atol=2e-3, rtol=2e-3):
        raise AssertionError("Pallas kernel output mismatches JAX reference")
    print("KERNEL_OK")
</pallas_src>

<mosaic_0001>
module attributes {stable_mosaic.version = 11 : i64} {
  func.func @seq2seq3_kernel(%arg0: memref<2x8x4xf32, #tpu.memory_space<vmem>>, %arg1: memref<4x128xf32, #tpu.memory_space<vmem>>, %arg2: memref<32x128xf32, #tpu.memory_space<vmem>>, %arg3: memref<1x128xf32, #tpu.memory_space<vmem>>, %arg4: memref<256x192xf32, #tpu.memory_space<vmem>>, %arg5: memref<1x192xf32, #tpu.memory_space<vmem>>, %arg6: memref<32x128xf32, #tpu.memory_space<vmem>>, %arg7: memref<32x128xf32, #tpu.memory_space<vmem>>, %arg8: memref<1x128xf32, #tpu.memory_space<vmem>>, %arg9: memref<192x30xf32, #tpu.memory_space<vmem>>, %arg10: memref<1x30xf32, #tpu.memory_space<vmem>>, %arg11: memref<2x30xf32, #tpu.memory_space<vmem>>, %arg12: memref<2x256xf32, #tpu.memory_space<vmem>>, %arg13: memref<2x192xf32, #tpu.memory_space<vmem>>) attributes {dimension_semantics = [], scalar_prefetch = 0 : i64, scratch_operands = 2 : i64, tpu.core_type = #tpu.core_type<tc>} {
    %c0 = arith.constant 0 : index
    %c0_0 = arith.constant 0 : index
    %0 = vector.load %arg1[%c0, %c0_0] : memref<4x128xf32, #tpu.memory_space<vmem>>, vector<4x128xf32>
    %c0_1 = arith.constant 0 : index
    %c0_2 = arith.constant 0 : index
    %1 = vector.load %arg2[%c0_1, %c0_2] : memref<32x128xf32, #tpu.memory_space<vmem>>, vector<32x128xf32>
    %c0_3 = arith.constant 0 : index
    %c0_4 = arith.constant 0 : index
    %2 = vector.load %arg6[%c0_3, %c0_4] : memref<32x128xf32, #tpu.memory_space<vmem>>, vector<32x128xf32>
    %c0_5 = arith.constant 0 : index
    %c0_6 = arith.constant 0 : index
    %3 = vector.load %arg7[%c0_5, %c0_6] : memref<32x128xf32, #tpu.memory_space<vmem>>, vector<32x128xf32>
    %c0_7 = arith.constant 0 : index
    %c0_8 = arith.constant 0 : index
    %4 = vector.load %arg3[%c0_7, %c0_8] : memref<1x128xf32, #tpu.memory_space<vmem>>, vector<1x128xf32>
    %5 = vector.shape_cast %4 : vector<1x128xf32> to vector<1x128xf32>
    %6 = vector.broadcast %5 : vector<1x128xf32> to vector<2x128xf32>
    %c0_9 = arith.constant 0 : index
    %c0_10 = arith.constant 0 : index
    %7 = vector.load %arg8[%c0_9, %c0_10] : memref<1x128xf32, #tpu.memory_space<vmem>>, vector<1x128xf32>
    %8 = vector.shape_cast %7 : vector<1x128xf32> to vector<1x128xf32>
    %9 = vector.broadcast %8 : vector<1x128xf32> to vector<2x128xf32>
    %c0_11 = arith.constant 0 : index
    %c0_12 = arith.constant 0 : index
    %c0_13 = arith.constant 0 : index
    %10 = vector.load %arg0[%c0_11, %c0_12, %c0_13] : memref<2x8x4xf32, #tpu.memory_space<vmem>>, vector<2x1x4xf32>
    %11 = vector.shape_cast %10 : vector<2x1x4xf32> to vector<2x4xf32>
    %cst = arith.constant dense<0.000000e+00> : vector<2x128xf32>
    %12 = tpu.matmul %11, %0, %cst {dimension_numbers = #tpu.dot_dimension_numbers<[1], [0], [0], [1], [0, 0, 1, 1], [], []>} : vector<2x4xf32>, vector<4x128xf32>, vector<2x128xf32> -> vector<2x128xf32>
    %13 = arith.addf %12, %6 : vector<2x128xf32>
    %c0_14 = arith.constant 0 : index
    %c1 = arith.constant 1 : index
    %c0_15 = arith.constant 0 : index
    %14 = vector.load %arg0[%c0_14, %c1, %c0_15] : memref<2x8x4xf32, #tpu.memory_space<vmem>>, vector<2x1x4xf32>
    %15 = vector.shape_cast %14 : vector<2x1x4xf32> to vector<2x4xf32>
    %cst_16 = arith.constant dense<0.000000e+00> : vector<2x128xf32>
    %16 = tpu.matmul %15, %0, %cst_16 {dimension_numbers = #tpu.dot_dimension_numbers<[1], [0], [0], [1], [0, 0, 1, 1], [], []>} : vector<2x4xf32>, vector<4x128xf32>, vector<2x128xf32> -> vector<2x128xf32>
    %17 = arith.addf %16, %6 : vector<2x128xf32>
    %c0_17 = arith.constant 0 : index
    %c2 = arith.constant 2 : index
    %c0_18 = arith.constant 0 : index
    %18 = vector.load %arg0[%c0_17, %c2, %c0_18] : memref<2x8x4xf32, #tpu.memory_space<vmem>>, vector<2x1x4xf32>
    %19 = vector.shape_cast %18 : vector<2x1x4xf32> to vector<2x4xf32>
    %cst_19 = arith.constant dense<0.000000e+00> : vector<2x128xf32>
    %20 = tpu.matmul %19, %0, %cst_19 {dimension_numbers = #tpu.dot_dimension_numbers<[1], [0], [0], [1], [0, 0, 1, 1], [], []>} : vector<2x4xf32>, vector<4x128xf32>, vector<2x128xf32> -> vector<2x128xf32>
    %21 = arith.addf %20, %6 : vector<2x128xf32>
    %c0_20 = arith.constant 0 : index
    %c3 = arith.constant 3 : index
    %c0_21 = arith.constant 0 : index
    %22 = vector.load %arg0[%c0_20, %c3, %c0_21] : memref<2x8x4xf32, #tpu.memory_space<vmem>>, vector<2x1x4xf32>
    %23 = vector.shape_cast %22 : vector<2x1x4xf32> to vector<2x4xf32>
    %cst_22 = arith.constant dense<0.000000e+00> : vector<2x128xf32>
    %24 = tpu.matmul %23, %0, %cst_22 {dimension_numbers = #tpu.dot_dimension_numbers<[1], [0], [0], [1], [0, 0, 1, 1], [], []>} : vector<2x4xf32>, vector<4x128xf32>, vector<2x128xf32> -> vector<2x128xf32>
    %25 = arith.addf %24, %6 : vector<2x128xf32>
    %c0_23 = arith.constant 0 : index
    %c4 = arith.constant 4 : index
    %c0_24 = arith.constant 0 : index
    %26 = vector.load %arg0[%c0_23, %c4, %c0_24] : memref<2x8x4xf32, #tpu.memory_space<vmem>>, vector<2x1x4xf32>
    %27 = vector.shape_cast %26 : vector<2x1x4xf32> to vector<2x4xf32>
    %cst_25 = arith.constant dense<0.000000e+00> : vector<2x128xf32>
    %28 = tpu.matmul %27, %0, %cst_25 {dimension_numbers = #tpu.dot_dimension_numbers<[1], [0], [0], [1], [0, 0, 1, 1], [], []>} : vector<2x4xf32>, vector<4x128xf32>, vector<2x128xf32> -> vector<2x128xf32>
    %29 = arith.addf %28, %6 : vector<2x128xf32>
    %c0_26 = arith.constant 0 : index
    %c5 = arith.constant 5 : index
    %c0_27 = arith.constant 0 : index
    %30 = vector.load %arg0[%c0_26, %c5, %c0_27] : memref<2x8x4xf32, #tpu.memory_space<vmem>>, vector<2x1x4xf32>
    %31 = vector.shape_cast %30 : vector<2x1x4xf32> to vector<2x4xf32>
    %cst_28 = arith.constant dense<0.000000e+00> : vector<2x128xf32>
    %32 = tpu.matmul %31, %0, %cst_28 {dimension_numbers = #tpu.dot_dimension_numbers<[1], [0], [0], [1], [0, 0, 1, 1], [], []>} : vector<2x4xf32>, vector<4x128xf32>, vector<2x128xf32> -> vector<2x128xf32>
    %33 = arith.addf %32, %6 : vector<2x128xf32>
    %c0_29 = arith.constant 0 : index
    %c6 = arith.constant 6 : index
    %c0_30 = arith.constant 0 : index
    %34 = vector.load %arg0[%c0_29, %c6, %c0_30] : memref<2x8x4xf32, #tpu.memory_space<vmem>>, vector<2x1x4xf32>
    %35 = vector.shape_cast %34 : vector<2x1x4xf32> to vector<2x4xf32>
    %cst_31 = arith.constant dense<0.000000e+00> : vector<2x128xf32>
    %36 = tpu.matmul %35, %0, %cst_31 {dimension_numbers = #tpu.dot_dimension_numbers<[1], [0], [0], [1], [0, 0, 1, 1], [], []>} : vector<2x4xf32>, vector<4x128xf32>, vector<2x128xf32> -> vector<2x128xf32>
    %37 = arith.addf %36, %6 : vector<2x128xf32>
    %c0_32 = arith.constant 0 : index
    %c7 = arith.constant 7 : index
    %c0_33 = arith.constant 0 : index
    %38 = vector.load %arg0[%c0_32, %c7, %c0_33] : memref<2x8x4xf32, #tpu.memory_space<vmem>>, vector<2x1x4xf32>
    %39 = vector.shape_cast %38 : vector<2x1x4xf32> to vector<2x4xf32>
    %cst_34 = arith.constant dense<0.000000e+00> : vector<2x128xf32>
    %40 = tpu.matmul %39, %0, %cst_34 {dimension_numbers = #tpu.dot_dimension_numbers<[1], [0], [0], [1], [0, 0, 1, 1], [], []>} : vector<2x4xf32>, vector<4x128xf32>, vector<2x128xf32> -> vector<2x128xf32>
    %41 = arith.addf %40, %6 : vector<2x128xf32>
    %cst_35 = arith.constant 0.000000e+00 : f32
    %42 = vector.broadcast %cst_35 : f32 to vector<2x32xf32>
    %cst_36 = arith.constant 0.000000e+00 : f32
    %43 = vector.broadcast %cst_36 : f32 to vector<2x32xf32>
    %cst_37 = arith.constant dense<0.000000e+00> : vector<2x128xf32>
    %44 = tpu.matmul %42, %1, %cst_37 {dimension_numbers = #tpu.dot_dimension_numbers<[1], [0], [0], [1], [0, 0, 1, 1], [], []>} : vector<2x32xf32>, vector<32x128xf32>, vector<2x128xf32> -> vector<2x128xf32>
    %45 = arith.addf %13, %44 : vector<2x128xf32>
    %46 = arith.negf %45 : vector<2x128xf32>
    %47 = math.exp %46 : vector<2x128xf32>
    %cst_38 = arith.constant 1.000000e+00 : f32
    %48 = vector.broadcast %cst_38 : f32 to vector<2x128xf32>
    %49 = arith.addf %48, %47 : vector<2x128xf32>
    %50 = arith.divf %48, %49 : vector<2x128xf32>
    %51 = math.tanh %45 : vector<2x128xf32>
    %52 = vector.extract_strided_slice %50 {offsets = [0, 0], sizes = [2, 32], strides = [1, 1]} : vector<2x128xf32> to vector<2x32xf32>
    %53 = vector.extract_strided_slice %50 {offsets = [0, 32], sizes = [2, 32], strides = [1, 1]} : vector<2x128xf32> to vector<2x32xf32>
    %54 = vector.extract_strided_slice %51 {offsets = [0, 64], sizes = [2, 32], strides = [1, 1]} : vector<2x128xf32> to vector<2x32xf32>
    %55 = vector.extract_strided_slice %50 {offsets = [0, 96], sizes = [2, 32], strides = [1, 1]} : vector<2x128xf32> to vector<2x32xf32>
    %56 = arith.mulf %53, %43 : vector<2x32xf32>
    %57 = arith.mulf %52, %54 : vector<2x32xf32>
    %58 = arith.addf %56, %57 : vector<2x32xf32>
    %59 = math.tanh %58 : vector<2x32xf32>
    %60 = arith.mulf %55, %59 : vector<2x32xf32>
    %c0_39 = arith.constant 0 : index
    %c0_40 = arith.constant 0 : index
    %61 = vector.load %arg12[%c0_39, %c0_40] : memref<2x256xf32, #tpu.memory_space<vmem>>, vector<2x32xf32>
    tpu.vector_store %arg12[%c0_39, %c0_40], %60 {strides = array<i32>} : memref<2x256xf32, #tpu.memory_space<vmem>>, vector<2x32xf32>,
    %cst_41 = arith.constant dense<0.000000e+00> : vector<2x128xf32>
    %62 = tpu.matmul %60, %1, %cst_41 {dimension_numbers = #tpu.dot_dimension_numbers<[1], [0], [0], [1], [0, 0, 1, 1], [], []>} : vector<2x32xf32>, vector<32x128xf32>, vector<2x128xf32> -> vector<2x128xf32>
    %63 = arith.addf %17, %62 : vector<2x128xf32>
    %64 = arith.negf %63 : vector<2x128xf32>
    %65 = math.exp %64 : vector<2x128xf32>
    %cst_42 = arith.constant 1.000000e+00 : f32
    %66 = vector.broadcast %cst_42 : f32 to vector<2x128xf32>
    %67 = arith.addf %66, %65 : vector<2x128xf32>
    %68 = arith.divf %66, %67 : vector<2x128xf32>
    %69 = math.tanh %63 : vector<2x128xf32>
    %70 = vector.extract_strided_slice %68 {offsets = [0, 0], sizes = [2, 32], strides = [1, 1]} : vector<2x128xf32> to vector<2x32xf32>
    %71 = vector.extract_strided_slice %68 {offsets = [0, 32], sizes = [2, 32], strides = [1, 1]} : vector<2x128xf32> to vector<2x32xf32>
    %72 = vector.extract_strided_slice %69 {offsets = [0, 64], sizes = [2, 32], strides = [1, 1]} : vector<2x128xf32> to vector<2x32xf32>
    %73 = vector.extract_strided_slice %68 {offsets = [0, 96], sizes = [2, 32], strides = [1, 1]} : vector<2x128xf32> to vector<2x32xf32>
    %74 = arith.mulf %71, %58 : vector<2x32xf32>
    %75 = arith.mulf %70, %72 : vector<2x32xf32>
    %76 = arith.addf %74, %75 : vector<2x32xf32>
    %77 = math.tanh %76 : vector<2x32xf32>
    %78 = arith.mulf %73, %77 : vector<2x32xf32>
    %c0_43 = arith.constant 0 : index
    %c32 = arith.constant 32 : index
    %79 = vector.load %arg12[%c0_43, %c32] : memref<2x256xf32, #tpu.memory_space<vmem>>, vector<2x32xf32>
    tpu.vector_store %arg12[%c0_43, %c32], %78 {strides = array<i32>} : memref<2x256xf32, #tpu.memory_space<vmem>>, vector<2x32xf32>,
    %cst_44 = arith.constant dense<0.000000e+00> : vector<2x128xf32>
    %80 = tpu.matmul %78, %1, %cst_44 {dimension_numbers = #tpu.dot_dimension_numbers<[1], [0], [0], [1], [0, 0, 1, 1], [], []>} : vector<2x32xf32>, vector<32x128xf32>, vector<2x128xf32> -> vector<2x128xf32>
    %81 = arith.addf %21, %80 : vector<2x128xf32>
    %82 = arith.negf %81 : vector<2x128xf32>
    %83 = math.exp %82 : vector<2x128xf32>
    %cst_45 = arith.constant 1.000000e+00 : f32
    %84 = vector.broadcast %cst_45 : f32 to vector<2x128xf32>
    %85 = arith.addf %84, %83 : vector<2x128xf32>
    %86 = arith.divf %84, %85 : vector<2x128xf32>
    %87 = math.tanh %81 : vector<2x128xf32>
    %88 = vector.extract_strided_slice %86 {offsets = [0, 0], sizes = [2, 32], strides = [1, 1]} : vector<2x128xf32> to vector<2x32xf32>
    %89 = vector.extract_strided_slice %86 {offsets = [0, 32], sizes = [2, 32], strides = [1, 1]} : vector<2x128xf32> to vector<2x32xf32>
    %90 = vector.extract_strided_slice %87 {offsets = [0, 64], sizes = [2, 32], strides = [1, 1]} : vector<2x128xf32> to vector<2x32xf32>
    %91 = vector.extract_strided_slice %86 {offsets = [0, 96], sizes = [2, 32], strides = [1, 1]} : vector<2x128xf32> to vector<2x32xf32>
    %92 = arith.mulf %89, %76 : vector<2x32xf32>
    %93 = arith.mulf %88, %90 : vector<2x32xf32>
    %94 = arith.addf %92, %93 : vector<2x32xf32>
    %95 = math.tanh %94 : vector<2x32xf32>
    %96 = arith.mulf %91, %95 : vector<2x32xf32>
    %c0_46 = arith.constant 0 : index
    %c64 = arith.constant 64 : index
    %97 = vector.load %arg12[%c0_46, %c64] : memref<2x256xf32, #tpu.memory_space<vmem>>, vector<2x32xf32>
    tpu.vector_store %arg12[%c0_46, %c64], %96 {strides = array<i32>} : memref<2x256xf32, #tpu.memory_space<vmem>>, vector<2x32xf32>,
    %cst_47 = arith.constant dense<0.000000e+00> : vector<2x128xf32>
    %98 = tpu.matmul %96, %1, %cst_47 {dimension_numbers = #tpu.dot_dimension_numbers<[1], [0], [0], [1], [0, 0, 1, 1], [], []>} : vector<2x32xf32>, vector<32x128xf32>, vector<2x128xf32> -> vector<2x128xf32>
    %99 = arith.addf %25, %98 : vector<2x128xf32>
    %100 = arith.negf %99 : vector<2x128xf32>
    %101 = math.exp %100 : vector<2x128xf32>
    %cst_48 = arith.constant 1.000000e+00 : f32
    %102 = vector.broadcast %cst_48 : f32 to vector<2x128xf32>
    %103 = arith.addf %102, %101 : vector<2x128xf32>
    %104 = arith.divf %102, %103 : vector<2x128xf32>
    %105 = math.tanh %99 : vector<2x128xf32>
    %106 = vector.extract_strided_slice %104 {offsets = [0, 0], sizes = [2, 32], strides = [1, 1]} : vector<2x128xf32> to vector<2x32xf32>
    %107 = vector.extract_strided_slice %104 {offsets = [0, 32], sizes = [2, 32], strides = [1, 1]} : vector<2x128xf32> to vector<2x32xf32>
    %108 = vector.extract_strided_slice %105 {offsets = [0, 64], sizes = [2, 32], strides = [1, 1]} : vector<2x128xf32> to vector<2x32xf32>
    %109 = vector.extract_strided_slice %104 {offsets = [0, 96], sizes = [2, 32], strides = [1, 1]} : vector<2x128xf32> to vector<2x32xf32>
    %110 = arith.mulf %107, %94 : vector<2x32xf32>
    %111 = arith.mulf %106, %108 : vector<2x32xf32>
    %112 = arith.addf %110, %111 : vector<2x32xf32>
    %113 = math.tanh %112 : vector<2x32xf32>
    %114 = arith.mulf %109, %113 : vector<2x32xf32>
    %c0_49 = arith.constant 0 : index
    %c96 = arith.constant 96 : index
    %115 = vector.load %arg12[%c0_49, %c96] : memref<2x256xf32, #tpu.memory_space<vmem>>, vector<2x32xf32>
    tpu.vector_store %arg12[%c0_49, %c96], %114 {strides = array<i32>} : memref<2x256xf32, #tpu.memory_space<vmem>>, vector<2x32xf32>,
    %cst_50 = arith.constant dense<0.000000e+00> : vector<2x128xf32>
    %116 = tpu.matmul %114, %1, %cst_50 {dimension_numbers = #tpu.dot_dimension_numbers<[1], [0], [0], [1], [0, 0, 1, 1], [], []>} : vector<2x32xf32>, vector<32x128xf32>, vector<2x128xf32> -> vector<2x128xf32>
    %117 = arith.addf %29, %116 : vector<2x128xf32>
    %118 = arith.negf %117 : vector<2x128xf32>
    %119 = math.exp %118 : vector<2x128xf32>
    %cst_51 = arith.constant 1.000000e+00 : f32
    %120 = vector.broadcast %cst_51 : f32 to vector<2x128xf32>
    %121 = arith.addf %120, %119 : vector<2x128xf32>
    %122 = arith.divf %120, %121 : vector<2x128xf32>
    %123 = math.tanh %117 : vector<2x128xf32>
    %124 = vector.extract_strided_slice %122 {offsets = [0, 0], sizes = [2, 32], strides = [1, 1]} : vector<2x128xf32> to vector<2x32xf32>
    %125 = vector.extract_strided_slice %122 {offsets = [0, 32], sizes = [2, 32], strides = [1, 1]} : vector<2x128xf32> to vector<2x32xf32>
    %126 = vector.extract_strided_slice %123 {offsets = [0, 64], sizes = [2, 32], strides = [1, 1]} : vector<2x128xf32> to vector<2x32xf32>
    %127 = vector.extract_strided_slice %122 {offsets = [0, 96], sizes = [2, 32], strides = [1, 1]} : vector<2x128xf32> to vector<2x32xf32>
    %128 = arith.mulf %125, %112 : vector<2x32xf32>
    %129 = arith.mulf %124, %126 : vector<2x32xf32>
    %130 = arith.addf %128, %129 : vector<2x32xf32>
    %131 = math.tanh %130 : vector<2x32xf32>
    %132 = arith.mulf %127, %131 : vector<2x32xf32>
    %c0_52 = arith.constant 0 : index
    %c128 = arith.constant 128 : index
    %133 = vector.load %arg12[%c0_52, %c128] : memref<2x256xf32, #tpu.memory_space<vmem>>, vector<2x32xf32>
    tpu.vector_store %arg12[%c0_52, %c128], %132 {strides = array<i32>} : memref<2x256xf32, #tpu.memory_space<vmem>>, vector<2x32xf32>,
    %cst_53 = arith.constant dense<0.000000e+00> : vector<2x128xf32>
    %134 = tpu.matmul %132, %1, %cst_53 {dimension_numbers = #tpu.dot_dimension_numbers<[1], [0], [0], [1], [0, 0, 1, 1], [], []>} : vector<2x32xf32>, vector<32x128xf32>, vector<2x128xf32> -> vector<2x128xf32>
    %135 = arith.addf %33, %134 : vector<2x128xf32>
    %136 = arith.negf %135 : vector<2x128xf32>
    %137 = math.exp %136 : vector<2x128xf32>
    %cst_54 = arith.constant 1.000000e+00 : f32
    %138 = vector.broadcast %cst_54 : f32 to vector<2x128xf32>
    %139 = arith.addf %138, %137 : vector<2x128xf32>
    %140 = arith.divf %138, %139 : vector<2x128xf32>
    %141 = math.tanh %135 : vector<2x128xf32>
    %142 = vector.extract_strided_slice %140 {offsets = [0, 0], sizes = [2, 32], strides = [1, 1]} : vector<2x128xf32> to vector<2x32xf32>
    %143 = vector.extract_strided_slice %140 {offsets = [0, 32], sizes = [2, 32], strides = [1, 1]} : vector<2x128xf32> to vector<2x32xf32>
    %144 = vector.extract_strided_slice %141 {offsets = [0, 64], sizes = [2, 32], strides = [1, 1]} : vector<2x128xf32> to vector<2x32xf32>
    %145 = vector.extract_strided_slice %140 {offsets = [0, 96], sizes = [2, 32], strides = [1, 1]} : vector<2x128xf32> to vector<2x32xf32>
    %146 = arith.mulf %143, %130 : vector<2x32xf32>
    %147 = arith.mulf %142, %144 : vector<2x32xf32>
    %148 = arith.addf %146, %147 : vector<2x32xf32>
    %149 = math.tanh %148 : vector<2x32xf32>
    %150 = arith.mulf %145, %149 : vector<2x32xf32>
    %c0_55 = arith.constant 0 : index
    %c160 = arith.constant 160 : index
    %151 = vector.load %arg12[%c0_55, %c160] : memref<2x256xf32, #tpu.memory_space<vmem>>, vector<2x32xf32>
    tpu.vector_store %arg12[%c0_55, %c160], %150 {strides = array<i32>} : memref<2x256xf32, #tpu.memory_space<vmem>>, vector<2x32xf32>,
    %cst_56 = arith.constant dense<0.000000e+00> : vector<2x128xf32>
    %152 = tpu.matmul %150, %1, %cst_56 {dimension_numbers = #tpu.dot_dimension_numbers<[1], [0], [0], [1], [0, 0, 1, 1], [], []>} : vector<2x32xf32>, vector<32x128xf32>, vector<2x128xf32> -> vector<2x128xf32>
    %153 = arith.addf %37, %152 : vector<2x128xf32>
    %154 = arith.negf %153 : vector<2x128xf32>
    %155 = math.exp %154 : vector<2x128xf32>
    %cst_57 = arith.constant 1.000000e+00 : f32
    %156 = vector.broadcast %cst_57 : f32 to vector<2x128xf32>
    %157 = arith.addf %156, %155 : vector<2x128xf32>
    %158 = arith.divf %156, %157 : vector<2x128xf32>
    %159 = math.tanh %153 : vector<2x128xf32>
    %160 = vector.extract_strided_slice %158 {offsets = [0, 0], sizes = [2, 32], strides = [1, 1]} : vector<2x128xf32> to vector<2x32xf32>
    %161 = vector.extract_strided_slice %158 {offsets = [0, 32], sizes = [2, 32], strides = [1, 1]} : vector<2x128xf32> to vector<2x32xf32>
    %162 = vector.extract_strided_slice %159 {offsets = [0, 64], sizes = [2, 32], strides = [1, 1]} : vector<2x128xf32> to vector<2x32xf32>
    %163 = vector.extract_strided_slice %158 {offsets = [0, 96], sizes = [2, 32], strides = [1, 1]} : vector<2x128xf32> to vector<2x32xf32>
    %164 = arith.mulf %161, %148 : vector<2x32xf32>
    %165 = arith.mulf %160, %162 : vector<2x32xf32>
    %166 = arith.addf %164, %165 : vector<2x32xf32>
    %167 = math.tanh %166 : vector<2x32xf32>
    %168 = arith.mulf %163, %167 : vector<2x32xf32>
    %c0_58 = arith.constant 0 : index
    %c192 = arith.constant 192 : index
    %169 = vector.load %arg12[%c0_58, %c192] : memref<2x256xf32, #tpu.memory_space<vmem>>, vector<2x32xf32>
    tpu.vector_store %arg12[%c0_58, %c192], %168 {strides = array<i32>} : memref<2x256xf32, #tpu.memory_space<vmem>>, vector<2x32xf32>,
    %cst_59 = arith.constant dense<0.000000e+00> : vector<2x128xf32>
    %170 = tpu.matmul %168, %1, %cst_59 {dimension_numbers = #tpu.dot_dimension_numbers<[1], [0], [0], [1], [0, 0, 1, 1], [], []>} : vector<2x32xf32>, vector<32x128xf32>, vector<2x128xf32> -> vector<2x128xf32>
    %171 = arith.addf %41, %170 : vector<2x128xf32>
    %172 = arith.negf %171 : vector<2x128xf32>
    %173 = math.exp %172 : vector<2x128xf32>
    %cst_60 = arith.constant 1.000000e+00 : f32
    %174 = vector.broadcast %cst_60 : f32 to vector<2x128xf32>
    %175 = arith.addf %174, %173 : vector<2x128xf32>
    %176 = arith.divf %174, %175 : vector<2x128xf32>
    %177 = math.tanh %171 : vector<2x128xf32>
    %178 = vector.extract_strided_slice %176 {offsets = [0, 0], sizes = [2, 32], strides = [1, 1]} : vector<2x128xf32> to vector<2x32xf32>
    %179 = vector.extract_strided_slice %176 {offsets = [0, 32], sizes = [2, 32], strides = [1, 1]} : vector<2x128xf32> to vector<2x32xf32>
    %180 = vector.extract_strided_slice %177 {offsets = [0, 64], sizes = [2, 32], strides = [1, 1]} : vector<2x128xf32> to vector<2x32xf32>
    %181 = vector.extract_strided_slice %176 {offsets = [0, 96], sizes = [2, 32], strides = [1, 1]} : vector<2x128xf32> to vector<2x32xf32>
    %182 = arith.mulf %179, %166 : vector<2x32xf32>
    %183 = arith.mulf %178, %180 : vector<2x32xf32>
    %184 = arith.addf %182, %183 : vector<2x32xf32>
    %185 = math.tanh %184 : vector<2x32xf32>
    %186 = arith.mulf %181, %185 : vector<2x32xf32>
    %c0_61 = arith.constant 0 : index
    %c224 = arith.constant 224 : index
    %187 = vector.load %arg12[%c0_61, %c224] : memref<2x256xf32, #tpu.memory_space<vmem>>, vector<2x32xf32>
    tpu.vector_store %arg12[%c0_61, %c224], %186 {strides = array<i32>} : memref<2x256xf32, #tpu.memory_space<vmem>>, vector<2x32xf32>,
    %c0_62 = arith.constant 0 : index
    %c0_63 = arith.constant 0 : index
    %188 = vector.load %arg12[%c0_62, %c0_63] : memref<2x256xf32, #tpu.memory_space<vmem>>, vector<2x256xf32>
    %c0_64 = arith.constant 0 : index
    %c0_65 = arith.constant 0 : index
    %189 = vector.load %arg4[%c0_64, %c0_65] : memref<256x192xf32, #tpu.memory_space<vmem>>, vector<256x192xf32>
    %cst_66 = arith.constant dense<0.000000e+00> : vector<2x192xf32>
    %190 = tpu.matmul %188, %189, %cst_66 {dimension_numbers = #tpu.dot_dimension_numbers<[1], [0], [0], [1], [0, 0, 1, 1], [], []>} : vector<2x256xf32>, vector<256x192xf32>, vector<2x192xf32> -> vector<2x192xf32>
    %c0_67 = arith.constant 0 : index
    %c0_68 = arith.constant 0 : index
    %191 = vector.load %arg5[%c0_67, %c0_68] : memref<1x192xf32, #tpu.memory_space<vmem>>, vector<1x192xf32>
    %192 = vector.broadcast %191 : vector<1x192xf32> to vector<2x192xf32>
    %193 = arith.addf %190, %192 : vector<2x192xf32>
    %194 = vector.extract_strided_slice %193 {offsets = [0, 0], sizes = [2, 32], strides = [1, 1]} : vector<2x192xf32> to vector<2x32xf32>
    %cst_69 = arith.constant dense<0.000000e+00> : vector<2x128xf32>
    %195 = tpu.matmul %194, %2, %cst_69 {dimension_numbers = #tpu.dot_dimension_numbers<[1], [0], [0], [1], [0, 0, 1, 1], [], []>} : vector<2x32xf32>, vector<32x128xf32>, vector<2x128xf32> -> vector<2x128xf32>
    %196 = arith.addf %195, %9 : vector<2x128xf32>
    %197 = vector.extract_strided_slice %193 {offsets = [0, 32], sizes = [2, 32], strides = [1, 1]} : vector<2x192xf32> to vector<2x32xf32>
    %cst_70 = arith.constant dense<0.000000e+00> : vector<2x128xf32>
    %198 = tpu.matmul %197, %2, %cst_70 {dimension_numbers = #tpu.dot_dimension_numbers<[1], [0], [0], [1], [0, 0, 1, 1], [], []>} : vector<2x32xf32>, vector<32x128xf32>, vector<2x128xf32> -> vector<2x128xf32>
    %199 = arith.addf %198, %9 : vector<2x128xf32>
    %200 = vector.extract_strided_slice %193 {offsets = [0, 64], sizes = [2, 32], strides = [1, 1]} : vector<2x192xf32> to vector<2x32xf32>
    %cst_71 = arith.constant dense<0.000000e+00> : vector<2x128xf32>
    %201 = tpu.matmul %200, %2, %cst_71 {dimension_numbers = #tpu.dot_dimension_numbers<[1], [0], [0], [1], [0, 0, 1, 1], [], []>} : vector<2x32xf32>, vector<32x128xf32>, vector<2x128xf32> -> vector<2x128xf32>
    %202 = arith.addf %201, %9 : vector<2x128xf32>
    %203 = vector.extract_strided_slice %193 {offsets = [0, 96], sizes = [2, 32], strides = [1, 1]} : vector<2x192xf32> to vector<2x32xf32>
    %cst_72 = arith.constant dense<0.000000e+00> : vector<2x128xf32>
    %204 = tpu.matmul %203, %2, %cst_72 {dimension_numbers = #tpu.dot_dimension_numbers<[1], [0], [0], [1], [0, 0, 1, 1], [], []>} : vector<2x32xf32>, vector<32x128xf32>, vector<2x128xf32> -> vector<2x128xf32>
    %205 = arith.addf %204, %9 : vector<2x128xf32>
    %206 = vector.extract_strided_slice %193 {offsets = [0, 128], sizes = [2, 32], strides = [1, 1]} : vector<2x192xf32> to vector<2x32xf32>
    %cst_73 = arith.constant dense<0.000000e+00> : vector<2x128xf32>
    %207 = tpu.matmul %206, %2, %cst_73 {dimension_numbers = #tpu.dot_dimension_numbers<[1], [0], [0], [1], [0, 0, 1, 1], [], []>} : vector<2x32xf32>, vector<32x128xf32>, vector<2x128xf32> -> vector<2x128xf32>
    %208 = arith.addf %207, %9 : vector<2x128xf32>
    %209 = vector.extract_strided_slice %193 {offsets = [0, 160], sizes = [2, 32], strides = [1, 1]} : vector<2x192xf32> to vector<2x32xf32>
    %cst_74 = arith.constant dense<0.000000e+00> : vector<2x128xf32>
    %210 = tpu.matmul %209, %2, %cst_74 {dimension_numbers = #tpu.dot_dimension_numbers<[1], [0], [0], [1], [0, 0, 1, 1], [], []>} : vector<2x32xf32>, vector<32x128xf32>, vector<2x128xf32> -> vector<2x128xf32>
    %211 = arith.addf %210, %9 : vector<2x128xf32>
    %cst_75 = arith.constant dense<0.000000e+00> : vector<2x128xf32>
    %212 = tpu.matmul %186, %3, %cst_75 {dimension_numbers = #tpu.dot_dimension_numbers<[1], [0], [0], [1], [0, 0, 1, 1], [], []>} : vector<2x32xf32>, vector<32x128xf32>, vector<2x128xf32> -> vector<2x128xf32>
    %213 = arith.addf %196, %212 : vector<2x128xf32>
    %214 = arith.negf %213 : vector<2x128xf32>
    %215 = math.exp %214 : vector<2x128xf32>
    %cst_76 = arith.constant 1.000000e+00 : f32
    %216 = vector.broadcast %cst_76 : f32 to vector<2x128xf32>
    %217 = arith.addf %216, %215 : vector<2x128xf32>
    %218 = arith.divf %216, %217 : vector<2x128xf32>
    %219 = math.tanh %213 : vector<2x128xf32>
    %220 = vector.extract_strided_slice %218 {offsets = [0, 0], sizes = [2, 32], strides = [1, 1]} : vector<2x128xf32> to vector<2x32xf32>
    %221 = vector.extract_strided_slice %218 {offsets = [0, 32], sizes = [2, 32], strides = [1, 1]} : vector<2x128xf32> to vector<2x32xf32>
    %222 = vector.extract_strided_slice %219 {offsets = [0, 64], sizes = [2, 32], strides = [1, 1]} : vector<2x128xf32> to vector<2x32xf32>
    %223 = vector.extract_strided_slice %218 {offsets = [0, 96], sizes = [2, 32], strides = [1, 1]} : vector<2x128xf32> to vector<2x32xf32>
    %224 = arith.mulf %221, %184 : vector<2x32xf32>
    %225 = arith.mulf %220, %222 : vector<2x32xf32>
    %226 = arith.addf %224, %225 : vector<2x32xf32>
    %227 = math.tanh %226 : vector<2x32xf32>
    %228 = arith.mulf %223, %227 : vector<2x32xf32>
    %c0_77 = arith.constant 0 : index
    %c0_78 = arith.constant 0 : index
    %229 = vector.load %arg13[%c0_77, %c0_78] : memref<2x192xf32, #tpu.memory_space<vmem>>, vector<2x32xf32>
    tpu.vector_store %arg13[%c0_77, %c0_78], %228 {strides = array<i32>} : memref<2x192xf32, #tpu.memory_space<vmem>>, vector<2x32xf32>,
    %cst_79 = arith.constant dense<0.000000e+00> : vector<2x128xf32>
    %230 = tpu.matmul %228, %3, %cst_79 {dimension_numbers = #tpu.dot_dimension_numbers<[1], [0], [0], [1], [0, 0, 1, 1], [], []>} : vector<2x32xf32>, vector<32x128xf32>, vector<2x128xf32> -> vector<2x128xf32>
    %231 = arith.addf %199, %230 : vector<2x128xf32>
    %232 = arith.negf %231 : vector<2x128xf32>
    %233 = math.exp %232 : vector<2x128xf32>
    %cst_80 = arith.constant 1.000000e+00 : f32
    %234 = vector.broadcast %cst_80 : f32 to vector<2x128xf32>
    %235 = arith.addf %234, %233 : vector<2x128xf32>
    %236 = arith.divf %234, %235 : vector<2x128xf32>
    %237 = math.tanh %231 : vector<2x128xf32>
    %238 = vector.extract_strided_slice %236 {offsets = [0, 0], sizes = [2, 32], strides = [1, 1]} : vector<2x128xf32> to vector<2x32xf32>
    %239 = vector.extract_strided_slice %236 {offsets = [0, 32], sizes = [2, 32], strides = [1, 1]} : vector<2x128xf32> to vector<2x32xf32>
    %240 = vector.extract_strided_slice %237 {offsets = [0, 64], sizes = [2, 32], strides = [1, 1]} : vector<2x128xf32> to vector<2x32xf32>
    %241 = vector.extract_strided_slice %236 {offsets = [0, 96], sizes = [2, 32], strides = [1, 1]} : vector<2x128xf32> to vector<2x32xf32>
    %242 = arith.mulf %239, %226 : vector<2x32xf32>
    %243 = arith.mulf %238, %240 : vector<2x32xf32>
    %244 = arith.addf %242, %243 : vector<2x32xf32>
    %245 = math.tanh %244 : vector<2x32xf32>
    %246 = arith.mulf %241, %245 : vector<2x32xf32>
    %c0_81 = arith.constant 0 : index
    %c32_82 = arith.constant 32 : index
    %247 = vector.load %arg13[%c0_81, %c32_82] : memref<2x192xf32, #tpu.memory_space<vmem>>, vector<2x32xf32>
    tpu.vector_store %arg13[%c0_81, %c32_82], %246 {strides = array<i32>} : memref<2x192xf32, #tpu.memory_space<vmem>>, vector<2x32xf32>,
    %cst_83 = arith.constant dense<0.000000e+00> : vector<2x128xf32>
    %248 = tpu.matmul %246, %3, %cst_83 {dimension_numbers = #tpu.dot_dimension_numbers<[1], [0], [0], [1], [0, 0, 1, 1], [], []>} : vector<2x32xf32>, vector<32x128xf32>, vector<2x128xf32> -> vector<2x128xf32>
    %249 = arith.addf %202, %248 : vector<2x128xf32>
    %250 = arith.negf %249 : vector<2x128xf32>
    %251 = math.exp %250 : vector<2x128xf32>
    %cst_84 = arith.constant 1.000000e+00 : f32
    %252 = vector.broadcast %cst_84 : f32 to vector<2x128xf32>
    %253 = arith.addf %252, %251 : vector<2x128xf32>
    %254 = arith.divf %252, %253 : vector<2x128xf32>
    %255 = math.tanh %249 : vector<2x128xf32>
    %256 = vector.extract_strided_slice %254 {offsets = [0, 0], sizes = [2, 32], strides = [1, 1]} : vector<2x128xf32> to vector<2x32xf32>
    %257 = vector.extract_strided_slice %254 {offsets = [0, 32], sizes = [2, 32], strides = [1, 1]} : vector<2x128xf32> to vector<2x32xf32>
    %258 = vector.extract_strided_slice %255 {offsets = [0, 64], sizes = [2, 32], strides = [1, 1]} : vector<2x128xf32> to vector<2x32xf32>
    %259 = vector.extract_strided_slice %254 {offsets = [0, 96], sizes = [2, 32], strides = [1, 1]} : vector<2x128xf32> to vector<2x32xf32>
    %260 = arith.mulf %257, %244 : vector<2x32xf32>
    %261 = arith.mulf %256, %258 : vector<2x32xf32>
    %262 = arith.addf %260, %261 : vector<2x32xf32>
    %263 = math.tanh %262 : vector<2x32xf32>
    %264 = arith.mulf %259, %263 : vector<2x32xf32>
    %c0_85 = arith.constant 0 : index
    %c64_86 = arith.constant 64 : index
    %265 = vector.load %arg13[%c0_85, %c64_86] : memref<2x192xf32, #tpu.memory_space<vmem>>, vector<2x32xf32>
    tpu.vector_store %arg13[%c0_85, %c64_86], %264 {strides = array<i32>} : memref<2x192xf32, #tpu.memory_space<vmem>>, vector<2x32xf32>,
    %cst_87 = arith.constant dense<0.000000e+00> : vector<2x128xf32>
    %266 = tpu.matmul %264, %3, %cst_87 {dimension_numbers = #tpu.dot_dimension_numbers<[1], [0], [0], [1], [0, 0, 1, 1], [], []>} : vector<2x32xf32>, vector<32x128xf32>, vector<2x128xf32> -> vector<2x128xf32>
    %267 = arith.addf %205, %266 : vector<2x128xf32>
    %268 = arith.negf %267 : vector<2x128xf32>
    %269 = math.exp %268 : vector<2x128xf32>
    %cst_88 = arith.constant 1.000000e+00 : f32
    %270 = vector.broadcast %cst_88 : f32 to vector<2x128xf32>
    %271 = arith.addf %270, %269 : vector<2x128xf32>
    %272 = arith.divf %270, %271 : vector<2x128xf32>
    %273 = math.tanh %267 : vector<2x128xf32>
    %274 = vector.extract_strided_slice %272 {offsets = [0, 0], sizes = [2, 32], strides = [1, 1]} : vector<2x128xf32> to vector<2x32xf32>
    %275 = vector.extract_strided_slice %272 {offsets = [0, 32], sizes = [2, 32], strides = [1, 1]} : vector<2x128xf32> to vector<2x32xf32>
    %276 = vector.extract_strided_slice %273 {offsets = [0, 64], sizes = [2, 32], strides = [1, 1]} : vector<2x128xf32> to vector<2x32xf32>
    %277 = vector.extract_strided_slice %272 {offsets = [0, 96], sizes = [2, 32], strides = [1, 1]} : vector<2x128xf32> to vector<2x32xf32>
    %278 = arith.mulf %275, %262 : vector<2x32xf32>
    %279 = arith.mulf %274, %276 : vector<2x32xf32>
    %280 = arith.addf %278, %279 : vector<2x32xf32>
    %281 = math.tanh %280 : vector<2x32xf32>
    %282 = arith.mulf %277, %281 : vector<2x32xf32>
    %c0_89 = arith.constant 0 : index
    %c96_90 = arith.constant 96 : index
    %283 = vector.load %arg13[%c0_89, %c96_90] : memref<2x192xf32, #tpu.memory_space<vmem>>, vector<2x32xf32>
    tpu.vector_store %arg13[%c0_89, %c96_90], %282 {strides = array<i32>} : memref<2x192xf32, #tpu.memory_space<vmem>>, vector<2x32xf32>,
    %cst_91 = arith.constant dense<0.000000e+00> : vector<2x128xf32>
    %284 = tpu.matmul %282, %3, %cst_91 {dimension_numbers = #tpu.dot_dimension_numbers<[1], [0], [0], [1], [0, 0, 1, 1], [], []>} : vector<2x32xf32>, vector<32x128xf32>, vector<2x128xf32> -> vector<2x128xf32>
    %285 = arith.addf %208, %284 : vector<2x128xf32>
    %286 = arith.negf %285 : vector<2x128xf32>
    %287 = math.exp %286 : vector<2x128xf32>
    %cst_92 = arith.constant 1.000000e+00 : f32
    %288 = vector.broadcast %cst_92 : f32 to vector<2x128xf32>
    %289 = arith.addf %288, %287 : vector<2x128xf32>
    %290 = arith.divf %288, %289 : vector<2x128xf32>
    %291 = math.tanh %285 : vector<2x128xf32>
    %292 = vector.extract_strided_slice %290 {offsets = [0, 0], sizes = [2, 32], strides = [1, 1]} : vector<2x128xf32> to vector<2x32xf32>
    %293 = vector.extract_strided_slice %290 {offsets = [0, 32], sizes = [2, 32], strides = [1, 1]} : vector<2x128xf32> to vector<2x32xf32>
    %294 = vector.extract_strided_slice %291 {offsets = [0, 64], sizes = [2, 32], strides = [1, 1]} : vector<2x128xf32> to vector<2x32xf32>
    %295 = vector.extract_strided_slice %290 {offsets = [0, 96], sizes = [2, 32], strides = [1, 1]} : vector<2x128xf32> to vector<2x32xf32>
    %296 = arith.mulf %293, %280 : vector<2x32xf32>
    %297 = arith.mulf %292, %294 : vector<2x32xf32>
    %298 = arith.addf %296, %297 : vector<2x32xf32>
    %299 = math.tanh %298 : vector<2x32xf32>
    %300 = arith.mulf %295, %299 : vector<2x32xf32>
    %c0_93 = arith.constant 0 : index
    %c128_94 = arith.constant 128 : index
    %301 = vector.load %arg13[%c0_93, %c128_94] : memref<2x192xf32, #tpu.memory_space<vmem>>, vector<2x32xf32>
    tpu.vector_store %arg13[%c0_93, %c128_94], %300 {strides = array<i32>} : memref<2x192xf32, #tpu.memory_space<vmem>>, vector<2x32xf32>,
    %cst_95 = arith.constant dense<0.000000e+00> : vector<2x128xf32>
    %302 = tpu.matmul %300, %3, %cst_95 {dimension_numbers = #tpu.dot_dimension_numbers<[1], [0], [0], [1], [0, 0, 1, 1], [], []>} : vector<2x32xf32>, vector<32x128xf32>, vector<2x128xf32> -> vector<2x128xf32>
    %303 = arith.addf %211, %302 : vector<2x128xf32>
    %304 = arith.negf %303 : vector<2x128xf32>
    %305 = math.exp %304 : vector<2x128xf32>
    %cst_96 = arith.constant 1.000000e+00 : f32
    %306 = vector.broadcast %cst_96 : f32 to vector<2x128xf32>
    %307 = arith.addf %306, %305 : vector<2x128xf32>
    %308 = arith.divf %306, %307 : vector<2x128xf32>
    %309 = math.tanh %303 : vector<2x128xf32>
    %310 = vector.extract_strided_slice %308 {offsets = [0, 0], sizes = [2, 32], strides = [1, 1]} : vector<2x128xf32> to vector<2x32xf32>
    %311 = vector.extract_strided_slice %308 {offsets = [0, 32], sizes = [2, 32], strides = [1, 1]} : vector<2x128xf32> to vector<2x32xf32>
    %312 = vector.extract_strided_slice %309 {offsets = [0, 64], sizes = [2, 32], strides = [1, 1]} : vector<2x128xf32> to vector<2x32xf32>
    %313 = vector.extract_strided_slice %308 {offsets = [0, 96], sizes = [2, 32], strides = [1, 1]} : vector<2x128xf32> to vector<2x32xf32>
    %314 = arith.mulf %311, %298 : vector<2x32xf32>
    %315 = arith.mulf %310, %312 : vector<2x32xf32>
    %316 = arith.addf %314, %315 : vector<2x32xf32>
    %317 = math.tanh %316 : vector<2x32xf32>
    %318 = arith.mulf %313, %317 : vector<2x32xf32>
    %c0_97 = arith.constant 0 : index
    %c160_98 = arith.constant 160 : index
    %319 = vector.load %arg13[%c0_97, %c160_98] : memref<2x192xf32, #tpu.memory_space<vmem>>, vector<2x32xf32>
    tpu.vector_store %arg13[%c0_97, %c160_98], %318 {strides = array<i32>} : memref<2x192xf32, #tpu.memory_space<vmem>>, vector<2x32xf32>,
    %c0_99 = arith.constant 0 : index
    %c0_100 = arith.constant 0 : index
    %320 = vector.load %arg13[%c0_99, %c0_100] : memref<2x192xf32, #tpu.memory_space<vmem>>, vector<2x192xf32>
    %c0_101 = arith.constant 0 : index
    %c0_102 = arith.constant 0 : index
    %321 = vector.load %arg9[%c0_101, %c0_102] : memref<192x30xf32, #tpu.memory_space<vmem>>, vector<192x30xf32>
    %cst_103 = arith.constant dense<0.000000e+00> : vector<2x30xf32>
    %322 = tpu.matmul %320, %321, %cst_103 {dimension_numbers = #tpu.dot_dimension_numbers<[1], [0], [0], [1], [0, 0, 1, 1], [], []>} : vector<2x192xf32>, vector<192x30xf32>, vector<2x30xf32> -> vector<2x30xf32>
    %c0_104 = arith.constant 0 : index
    %c0_105 = arith.constant 0 : index
    %323 = vector.load %arg10[%c0_104, %c0_105] : memref<1x30xf32, #tpu.memory_space<vmem>>, vector<1x30xf32>
    %324 = vector.broadcast %323 : vector<1x30xf32> to vector<2x30xf32>
    %325 = arith.addf %322, %324 : vector<2x30xf32>
    %c0_106 = arith.constant 0 : index
    %c0_107 = arith.constant 0 : index
    %326 = vector.load %arg11[%c0_106, %c0_107] : memref<2x30xf32, #tpu.memory_space<vmem>>, vector<2x30xf32>
    tpu.vector_store %arg11[%c0_106, %c0_107], %325 {strides = array<i32>} : memref<2x30xf32, #tpu.memory_space<vmem>>, vector<2x30xf32>,
    return
  }
}

</mosaic_0001>

<bundles_post_ra>
// kernel: tpu_custom_call.1
= control target key start
LH: loop header
LB: loop body
LE: loop exit
PB: predicated region body
PF: predicated region fallthrough
CT: control target
= control target key end

     0   :  { %vm76_vm0 = vcmask 1043456   ;;  %v3792_v1 = vmov 0.0   ;;  %vm3793_vm1 = vmmov 0   ;;  %vm71_vm2 = vcmask 1041409   ;;  %s4623_s0 = inlined_call_operand.vmem [shape: f32[2,8,4], index: 0, kind: input, shape index: {}]   ;;  %s4624_s1 = inlined_call_operand.vmem [shape: f32[4,128], index: 1, kind: input, shape index: {}]   ;;  %s4625_s2 = inlined_call_operand.vmem [shape: f32[32,128], index: 2, kind: input, shape index: {}]   ;;  %s4626_s3 = inlined_call_operand.vmem [shape: f32[1,128], index: 3, kind: input, shape index: {}]   ;;  %s4627_s4 = inlined_call_operand.vmem [shape: f32[256,192], index: 4, kind: input, shape index: {}]   ;;  %s4628_s5 = inlined_call_operand.vmem [shape: f32[1,192], index: 5, kind: input, shape index: {}]   ;;  %s4629_s6 = inlined_call_operand.vmem [shape: f32[32,128], index: 6, kind: input, shape index: {}]   ;;  %s4630_s7 = inlined_call_operand.vmem [shape: f32[32,128], index: 7, kind: input, shape index: {}]   ;;  %s4631_s8 = inlined_call_operand.vmem [shape: f32[1,128], index: 8, kind: input, shape index: {}]   ;;  %s4632_s9 = inlined_call_operand.vmem [shape: f32[192,30], index: 9, kind: input, shape index: {}]   ;;  %s4633_s10 = inlined_call_operand.vmem [shape: f32[1,30], index: 10, kind: input, shape index: {}]   ;;  %s4634_s11 = inlined_call_operand.hbm [shape: f32[2,30], index: 11, kind: output, shape index: {}]  }
   0x1   :  { %v3863_v0 = vld [vmem:[%s4624_s1] sm:$0xf]  ;;  %3132 = vmatprep.subr.mxu1 %v3792_v1  ;;  %3134 = vmatprep.mubr.msk.f32.mxu1 %vm3793_vm1, %v3792_v1  ;;  %v151_v3 = vld [vmem:[%s4623_s0 + $0x9] sm:$0x1]  ;;  %vm73_vm3 = vcmask 31744  }
   0x2   :  { %v150_v2 = vld [vmem:[%s4623_s0 + $0x1] sm:$0x1]  ;;  %3133 = vmatpush3.msk.msra.mxu1 %vm76_vm0, %v3863_v0  ;;  %v154_v4 = vrot.slane %v151_v3, 7  ;;  %v307_v5 = vld [vmem:[%s4623_s0 + $0xb] sm:$0x1]  ;;  %3127 = vmatprep.subr.mxu0 %v3792_v1 }
   0x3   :  { %3142 = vmatprep.subr.mxu1 %v3792_v1  ;;  %v306_v6 = vld [vmem:[%s4623_s0 + $0x3] sm:$0x1]  ;;  %v310_v7 = vrot.slane %v307_v5, 7  ;;  %v463_v8 = vld [vmem:[%s4623_s0 + $0xd] sm:$0x1]  ;;  %3128 = vmatpush3.msk.msra.mxu0 %vm76_vm0, %v3863_v0 }
   0x4   :  { %v155_v9 = vsel %vm71_vm2, %v154_v4, %v150_v2  ;;  %3129 = vmatprep.mubr.msk.f32.mxu0 %vm3793_vm1, %v3792_v1  ;;  %3137 = vmatprep.subr.mxu0 %v3792_v1  ;;  %v66_v10 = vld [vmem:[%s4623_s0] sm:$0x1]  ;;  %v67_v11 = vld [vmem:[%s4623_s0 + $0x8] sm:$0x1]  ;;  %v466_v13 = vrot.slane %v463_v8, 7 }
   0x5   :  { %3135 = vmatmul.mubr.msk.f32.vlgmr.msra.gmra.mrb[0].mxu1 %vm73_vm3, %v155_v9  ;;  %v311_v12 = vsel %vm71_vm2, %v310_v7, %v306_v6  ;;  %v70_v14 = vrot.slane %v67_v11, 7 }
   0x6   :  { %3143 = vmatpush3.msk.msra.mxu1 %vm76_vm0, %v3863_v0  ;;  %3144 = vmatprep.mubr.msk.f32.mxu1 %vm3793_vm1, %v3792_v1 }
   0x7   :  { %16 = vsyncpa [#allocation5], 0  ;;  %3152 = vmatprep.subr.mxu1 %v3792_v1  ;;  %v462_v15 = vld [vmem:[%s4623_s0 + $0x5] sm:$0x1]  ;;  %v619_v16 = vld [vmem:[%s4623_s0 + $0xf] sm:$0x1]  ;;  %v72_v17 = vsel %vm71_vm2, %v70_v14, %v66_v10 }
   0x8   :  { %3130 = vmatmul.mubr.msk.f32.vlgmr.msra.gmra.mrb[0].mxu0 %vm73_vm3, %v72_v17  ;;  %v467_v18 = vsel %vm71_vm2, %v466_v13, %v462_v15  ;;  %v622_v19 = vrot.slane %v619_v16, 7  ;;  %v618_v20 = vld [vmem:[%s4623_s0 + $0x7] sm:$0x1]  ;;  %v41_v22 = vld [vmem:[%s4625_s2 + $0x8] sm:$0xff]  ;;  %v3794_v25 = vmov 0.0|0.0   ;;  %v42_v26 = vld [vmem:[%s4625_s2 + $0x10] sm:$0xff] }
   0x9   :  { %3145 = vmatmul.mubr.msk.f32.vlgmr.msra.gmra.mrb[2].mxu1 %vm73_vm3, %v311_v12  ;;  %v40_v21 = vld [vmem:[%s4625_s2] sm:$0xff]  ;;  %3138 = vmatpush3.msk.msra.mxu0 %vm76_vm0, %v3863_v0  ;;  %v43_v27 = vld [vmem:[%s4625_s2 + $0x18] sm:$0xff]  ;;  %s3795_s27 = smov 64   ;;  %vm696_vm4 = vcmask 261120   ;;  %v229_v2 = vld [vmem:[%s4623_s0 + $0xa] sm:$0x1] }
   0xa   :  { %3153 = vmatpush3.msk.msra.mxu1 %vm76_vm0, %v3863_v0  ;;  %3154 = vmatprep.mubr.msk.f32.mxu1 %vm3793_vm1, %v3792_v1  ;;  %v623_v23 = vsel %vm71_vm2, %v622_v19, %v618_v20  ;;  %v3941_v24 = vpack.c.bf16 %v41_v22, %v40_v21  ;;  %v3952_v28 = vpack.c.bf16 %v43_v27, %v42_v26  ;;  %v3969_v31 = vld [vmem:[%s4626_s3] ss:$0 sm:$0xff]  ;;  %s3796_s3 = smov 32   ;;  %v228_v63 = vld [vmem:[%s4623_s0 + $0x2] sm:$0x1]  ;;  %v232_v3 = vrot.slane %v229_v2, 7 }
   0xb   :  { %3162 = vmatprep.subr.mxu1 %v3792_v1  ;;  %3139 = vmatprep.mubr.msk.f32.mxu0 %vm3793_vm1, %v3792_v1  ;;  %v385_v4 = vld [vmem:[%s4623_s0 + $0xc] sm:$0x1]  ;;  %v384_v5 = vld [vmem:[%s4623_s0 + $0x4] sm:$0x1]  ;;  %v541_v7 = vld [vmem:[%s4623_s0 + $0xe] sm:$0x1] }
   0xc   :  { %3147 = vmatprep.subr.mxu0 %v3792_v1  ;;  %v388_v6 = vrot.slane %v385_v4, 7  ;;  %v233_v8 = vsel %vm71_vm2, %v232_v3, %v228_v63  ;;  %v544_v10 = vrot.slane %v541_v7, 7  ;;  %v540_v11 = vld [vmem:[%s4623_s0 + $0x6] sm:$0x1]  ;;  %vm806_vm5 = vcmask 254976   ;;  %s3798_s2 = smov 96  }
   0xd   :  { %3155 = vmatmul.mubr.msk.f32.vlgmr.msra.gmra.mrb[4].mxu1 %vm73_vm3, %v467_v18  ;;  %3140 = vmatmul.mubr.msk.f32.vlgmr.msra.gmra.mrb[2].mxu0 %vm73_vm3, %v233_v8  ;;  %vm918_vm6 = vcmask 517376   ;;  %vm1030_vm7 = vcmask 779776   ;;  %vm1131_vm8 = vcmask 1042176   ;;  %vm2867_vm9 = vcmask 523264  }
   0xe   :  { %3163 = vmatpush3.msk.msra.mxu1 %vm76_vm0, %v3863_v0  ;;  %3164 = vmatprep.mubr.msk.f32.mxu1 %vm3793_vm1, %v3792_v1  ;;  %v389_v9 = vsel %vm71_vm2, %v388_v6, %v384_v5  ;;  %v545_v12 = vsel %vm71_vm2, %v544_v10, %v540_v11  ;;  %vm2940_vm10 = vcmask 238592  }
   0xf   :  { %3387 = vmatprep.subr.bf16.mxu1 %v3794_v25  ;;  %3148 = vmatpush3.msk.msra.mxu0 %vm76_vm0, %v3863_v0 }
  0x10   :  { %3149 = vmatprep.mubr.msk.f32.mxu0 %vm3793_vm1, %v3792_v1  ;;  %3157 = vmatprep.subr.mxu0 %v3792_v1 }
  0x11   :  { %3165 = vmatmul.mubr.msk.f32.vlgmr.msra.gmra.mrb[6].mxu1 %vm73_vm3, %v623_v23  ;;  %3150 = vmatmul.mubr.msk.f32.vlgmr.msra.gmra.mrb[4].mxu0 %vm73_vm3, %v389_v9 }
  0x12   :  { %3389 = vmatpush3.bf16.msra.mxu1 %v3941_v24  ;;  %3175 = vmatprep.mubr.msk.f32.mxu1 %vm3793_vm1, %v3792_v1 }
  0x13   :  { %3390 = vmatprep.subr.bf16.mxu1 %v3794_v25  ;;  %3158 = vmatpush3.msk.msra.mxu0 %vm76_vm0, %v3863_v0 }
  0x14   :  { %3159 = vmatprep.mubr.msk.f32.mxu0 %vm3793_vm1, %v3792_v1  ;;  %3399 = vmatprep.subr.bf16.mxu0 %v3794_v25 }
  0x15   :  { %3160 = vmatmul.mubr.msk.f32.vlgmr.msra.gmra.mrb[6].mxu0 %vm73_vm3, %v545_v12 }
  0x16   :  { %3392 = vmatpush3.bf16.msra.mxu1 %v3952_v28  ;;  %3401 = vmatpush3.bf16.msra.mxu0 %v3941_v24 }
  0x17   :  { %3393 = vmatprep.subr.bf16.mxu1 %v3794_v25  ;;  %3197 = vmatprep.mubr.msk.f32.mxu0 %vm3793_vm1, %v3792_v1 }
  0x18   :  { %3402 = vmatprep.subr.bf16.mxu0 %v3794_v25 }
  0x19   :  { %3176 = vmatmul.mubr.f32.vlgmr.msra.gmra.mrb[8].mxu1 %v3792_v1 }
  0x1a   :  { %3395 = vmatpush3.bf16.msra.mxu1 %v3941_v24  ;;  %3186 = vmatprep.mubr.msk.f32.mxu1 %vm3793_vm1, %v3792_v1 }
  0x1b   :  { %3396 = vmatprep.subr.bf16.mxu1 %v3794_v25  ;;  %3404 = vmatpush3.bf16.msra.mxu0 %v3952_v28 }
  0x1c   :  { %3411 = vmatprep.subr.bf16.mxu0 %v3794_v25 }
  0x1e   :  { %3398 = vmatpush3.bf16.msra.mxu1 %v3952_v28 }
  0x1f   :  { %3405 = vmatprep.subr.bf16.mxu1 %v3794_v25 }
  0xdb   :  { %v146_v29 = vpop.f32.mrb[0].mxu0 }
  0xdc   :  { %v3131_v30 = vpop.f32.mrb[1].mxu0  ;;  %v147_v32 = vadd.f32 %v3969_v31, %v146_v29 }
  0xec   :  { %v766_v33 = vpop.f32.mrb[8].mxu1 }
  0xed   :  { %v770_v34 = vadd.f32 %v766_v33, %v147_v32  ;;  %v3177_v35 = vpop.f32.mrb[9].mxu1 }
  0xef   :  { %3656 = vtanh.f32 %v770_v34  ;;  %v2974_v37 = vmul.f32 -1.442695, %v770_v34 }
  0xf1   :  { %3658 = vpow2.f32 %v2974_v37 }
  0xf9   :  { %v3657_v36 = vpop.eup %3656 }
  0xfa   :  { %780 = vrot.lane.b32.xlu0 %v3657_v36, %s3795_s27 }
  0xfb   :  { %v3659_v38 = vpop.eup %3658 }
  0xfc   :  { %v774_v39 = vadd.f32 1.0, %v3659_v38 }
  0xfe   :  { %3660 = vrcp.f32 %v774_v39 }
 0x108   :  { %v3661_v40 = vpop.eup %3660 }
 0x109   :  { %v778_v43 = vmul.f32 0.0, %v3661_v40 }
 0x16c   :  { %v781_v41 = vpop.permute.xlu0 %780 }
 0x16d   :  { %v783_v42 = vmul.f32 %v3661_v40, %v781_v41 }
 0x16f   :  { %785 = vrot.lane.b32.xlu0 %v783_v42, %s3796_s3 }
 0x1e1   :  { %v786_v44 = vpop.permute.xlu0 %785 }
 0x1e2   :  { %v788_v45 = vadd.f32 %v786_v44, %v778_v43 }
 0x1e4   :  { %3662 = vtanh.f32 %v788_v45 }
 0x1ee   :  { %v3663_v46 = vpop.eup %3662 }
 0x1ef   :  { %791 = vrot.lane.b32.xlu1 %v3663_v46, %s3795_s27 }
 0x261   :  { %v792_v47 = vpop.permute.xlu1 %791 }
 0x262   :  { %v3975_v48 = vmul.f32 %v3661_v40, %v792_v47 }
 0x264   :  { %808 = vrot.lane.b32.xlu1 %v3975_v48, %s3796_s3 }
 0x2d6   :  { %v809_v49 = vpop.permute.xlu1 %808 }
 0x2d7   :  { %3187 = vmatmul.mubr.msk.f32.vlgmr.msra.gmra.mrb[0].mxu1 %vm696_vm4, %v809_v49 }
 0x2d8   :  { %3407 = vmatpush3.bf16.msra.mxu1 %v3941_v24  ;;  %3208 = vmatprep.mubr.msk.f32.mxu1 %vm3793_vm1, %v3792_v1 }
 0x2d9   :  { %3408 = vmatprep.subr.bf16.mxu1 %v3794_v25 }
 0x2dc   :  { %3410 = vmatpush3.bf16.msra.mxu1 %v3952_v28 }
 0x2dd   :  { %3417 = vmatprep.subr.bf16.mxu1 %v3794_v25 }
 0x3aa   :  { %v878_v50 = vpop.f32.mrb[0].mxu1 }
 0x3ab   :  { %v3609_v51 = vadd.f32 %v3969_v31, %v878_v50  ;;  %v3188_v52 = vpop.f32.mrb[1].mxu1 }
 0x3ad   :  { %3664 = vtanh.f32 %v3609_v51  ;;  %v2976_v54 = vmul.f32 -1.442695, %v3609_v51 }
 0x3af   :  { %3666 = vpow2.f32 %v2976_v54 }
 0x3b7   :  { %v3665_v53 = vpop.eup %3664 }
 0x3b8   :  { %892 = vrot.lane.b32.xlu0 %v3665_v53, %s3795_s27 }
 0x3b9   :  { %v3667_v55 = vpop.eup %3666 }
 0x3ba   :  { %v886_v56 = vadd.f32 1.0, %v3667_v55 }
 0x3bc   :  { %3668 = vrcp.f32 %v886_v56 }
 0x3c6   :  { %v3669_v57 = vpop.eup %3668 }
 0x3c7   :  { %v890_v60 = vmul.f32 %v3669_v57, %v788_v45 }
 0x42a   :  { %v893_v58 = vpop.permute.xlu0 %892 }
 0x42b   :  { %v895_v59 = vmul.f32 %v3669_v57, %v893_v58 }
 0x42d   :  { %897 = vrot.lane.b32.xlu1 %v895_v59, %s3796_s3 }
 0x49f   :  { %v898_v61 = vpop.permute.xlu1 %897 }
 0x4a0   :  { %v900_v62 = vadd.f32 %v898_v61, %v890_v60 }
 0x4a2   :  { %3670 = vtanh.f32 %v900_v62 }
 0x4ac   :  { %v3671_v13 = vpop.eup %3670 }
 0x4ad   :  { %903 = vrot.lane.b32.xlu0 %v3671_v13, %s3795_s27 }
 0x51f   :  { %v904_v0 = vpop.permute.xlu0 %903 }
 0x520   :  { %v4030_v14 = vmul.f32 %v3669_v57, %v904_v0 }
 0x522   :  { %920 = vrot.lane.b32.xlu1 %v4030_v14, %s3796_s3 }
 0x594   :  { %v921_v15 = vpop.permute.xlu1 %920 }
 0x595   :  { %3198 = vmatmul.mubr.msk.f32.vlgmr.msra.gmra.mrb[2].mxu0 %vm696_vm4, %v921_v15 }
 0x596   :  { %3413 = vmatpush3.bf16.msra.mxu0 %v3941_v24  ;;  %3219 = vmatprep.mubr.msk.f32.mxu0 %vm3793_vm1, %v3792_v1 }
 0x597   :  { %3414 = vmatprep.subr.bf16.mxu0 %v3794_v25 }
 0x59a   :  { %3416 = vmatpush3.bf16.msra.mxu0 %v3952_v28 }
 0x59b   :  { %3423 = vmatprep.subr.bf16.mxu0 %v3794_v25 }
 0x668   :  { %v990_v16 = vpop.f32.mrb[2].mxu0 }
 0x669   :  { %v3610_v17 = vadd.f32 %v3969_v31, %v990_v16  ;;  %v3199_v18 = vpop.f32.mrb[3].mxu0 }
 0x66b   :  { %3672 = vtanh.f32 %v3610_v17  ;;  %v2978_v20 = vmul.f32 -1.442695, %v3610_v17 }
 0x66d   :  { %3674 = vpow2.f32 %v2978_v20 }
 0x675   :  { %v3673_v19 = vpop.eup %3672 }
 0x676   :  { %1004 = vrot.lane.b32.xlu0 %v3673_v19, %s3795_s27 }
 0x677   :  { %v3675_v21 = vpop.eup %3674 }
 0x678   :  { %v998_v22 = vadd.f32 1.0, %v3675_v21 }
 0x67a   :  { %3676 = vrcp.f32 %v998_v22 }
 0x684   :  { %v3677_v23 = vpop.eup %3676 }
 0x685   :  { %v1002_v29 = vmul.f32 %v3677_v23, %v900_v62 }
 0x6e8   :  { %v1005_v26 = vpop.permute.xlu0 %1004 }
 0x6e9   :  { %v1007_v27 = vmul.f32 %v3677_v23, %v1005_v26 }
 0x6eb   :  { %1009 = vrot.lane.b32.xlu1 %v1007_v27, %s3796_s3 }
 0x75d   :  { %v1010_v30 = vpop.permute.xlu1 %1009 }
 0x75e   :  { %v1012_v32 = vadd.f32 %v1010_v30, %v1002_v29 }
 0x760   :  { %3678 = vtanh.f32 %v1012_v32 }
 0x76a   :  { %v3679_v33 = vpop.eup %3678 }
 0x76b   :  { %1015 = vrot.lane.b32.xlu0 %v3679_v33, %s3795_s27 }
 0x7dd   :  { %v1016_v34 = vpop.permute.xlu0 %1015 }
 0x7de   :  { %v4045_v35 = vmul.f32 %v3677_v23, %v1016_v34 }
 0x7e0   :  { %1032 = vrot.lane.b32.xlu1 %v4045_v35, %s3796_s3 }
 0x852   :  { %v1033_v36 = vpop.permute.xlu1 %1032 }
 0x853   :  { %3209 = vmatmul.mubr.msk.f32.vlgmr.msra.gmra.mrb[2].mxu1 %vm696_vm4, %v1033_v36 }
 0x854   :  { %3419 = vmatpush3.bf16.msra.mxu1 %v3941_v24  ;;  %3230 = vmatprep.mubr.msk.f32.mxu1 %vm3793_vm1, %v3792_v1 }
 0x855   :  { %3420 = vmatprep.subr.bf16.mxu1 %v3794_v25 }
 0x858   :  { %3422 = vmatpush3.bf16.msra.mxu1 %v3952_v28 }
 0x859   :  { %3429 = vmatprep.subr.bf16.mxu1 %v3794_v25 }
 0x926   :  { %v1102_v37 = vpop.f32.mrb[2].mxu1 }
 0x927   :  { %v3611_v38 = vadd.f32 %v3969_v31, %v1102_v37  ;;  %v3210_v39 = vpop.f32.mrb[3].mxu1 }
 0x929   :  { %3680 = vtanh.f32 %v3611_v38  ;;  %v2980_v41 = vmul.f32 -1.442695, %v3611_v38 }
 0x92b   :  { %3682 = vpow2.f32 %v2980_v41 }
 0x933   :  { %v3681_v40 = vpop.eup %3680 }
 0x934   :  { %1116 = vrot.lane.b32.xlu0 %v3681_v40, %s3795_s27 }
 0x935   :  { %v3683_v42 = vpop.eup %3682 }
 0x936   :  { %v1110_v43 = vadd.f32 1.0, %v3683_v42 }
 0x938   :  { %3684 = vrcp.f32 %v1110_v43 }
 0x942   :  { %v3685_v44 = vpop.eup %3684 }
 0x943   :  { %v1114_v47 = vmul.f32 %v3685_v44, %v1012_v32 }
 0x9a6   :  { %v1117_v45 = vpop.permute.xlu0 %1116 }
 0x9a7   :  { %v1119_v46 = vmul.f32 %v3685_v44, %v1117_v45 }
 0x9a9   :  { %1121 = vrot.lane.b32.xlu1 %v1119_v46, %s3796_s3 }
 0xa1b   :  { %v1122_v49 = vpop.permute.xlu1 %1121 }
 0xa1c   :  { %v1124_v50 = vadd.f32 %v1122_v49, %v1114_v47 }
 0xa1e   :  { %3686 = vtanh.f32 %v1124_v50 }
 0xa28   :  { %v3687_v51 = vpop.eup %3686 }
 0xa29   :  { %1127 = vrot.lane.b32.xlu0 %v3687_v51, %s3795_s27  ;;  %v3797_v51 = vmov 1983009808  }
 0xa9b   :  { %v1128_v52 = vpop.permute.xlu0 %1127 }
 0xa9c   :  { %v4060_v53 = vmul.f32 %v3685_v44, %v1128_v52  ;;  %v797_v52 = vunpack.c.l.s4 %v3797_v51  ;;  %v1592_v51 = vld [vmem:[%s4627_s4 + $0xc0] sm:$0xff] }
 0xa9e   :  { %1134 = vrot.lane.b32.xlu1 %v4060_v53, %s3796_s3 }
 0xb10   :  { %v1135_v54 = vpop.permute.xlu1 %1134 }
 0xb11   :  { %3220 = vmatmul.mubr.msk.f32.vlgmr.msra.gmra.mrb[4].mxu0 %vm696_vm4, %v1135_v54  ;;  %v799_v54 = vlaneseq }
 0xb12   :  { %3425 = vmatpush3.bf16.msra.mxu0 %v3941_v24  ;;  %3241 = vmatprep.mubr.msk.f32.mxu0 %vm3793_vm1, %v3792_v1 }
 0xb13   :  { %3426 = vmatprep.subr.bf16.mxu0 %v3794_v25 }
 0xb16   :  { %3428 = vmatpush3.bf16.msra.mxu0 %v3952_v28 }
 0xbe4   :  { %v1204_v55 = vpop.f32.mrb[4].mxu0 }
 0xbe5   :  { %v3612_v56 = vadd.f32 %v3969_v31, %v1204_v55  ;;  %v3221_v57 = vpop.f32.mrb[5].mxu0  ;;  %v798_v55 = vunpack.c.0.s8 %v797_v52  ;;  %v1594_v52 = vld [vmem:[%s4627_s4 + $0xd0] sm:$0xff] }
 0xbe7   :  { %3688 = vtanh.f32 %v3612_v56  ;;  %v2982_v59 = vmul.f32 -1.442695, %v3612_v56  ;;  %v4109_v56 = vshrl.u32 %v799_v54, 7  ;;  %v1597_v54 = vld [vmem:[%s4627_s4 + $0xe8] sm:$0xff] }
 0xbe9   :  { %3690 = vpow2.f32 %v2982_v59  ;;  %v4112_v57 = vsub.s32 %v798_v55, %v4109_v56  ;;  %v1599_v55 = vld [vmem:[%s4627_s4 + $0xf8] sm:$0xff] }
 0xbeb   :  { %v802_v59 = vrot.slane %v3975_v48, %v4112_v57 }
 0xbf1   :  { %v3689_v58 = vpop.eup %3688 }
 0xbf2   :  { %1218 = vrot.lane.b32.xlu0 %v3689_v58, %s3795_s27 }
 0xbf3   :  { %v3691_v60 = vpop.eup %3690 }
 0xbf4   :  { %v1212_v61 = vadd.f32 1.0, %v3691_v60 }
 0xbf6   :  { %3692 = vrcp.f32 %v1212_v61 }
 0xc00   :  { %v3693_v62 = vpop.eup %3692 }
 0xc01   :  { %v1216_v3 = vmul.f32 %v3693_v62, %v1124_v50 }
 0xc64   :  { %v1219_v63 = vpop.permute.xlu0 %1218 }
 0xc65   :  { %v1221_v2 = vmul.f32 %v3693_v62, %v1219_v63 }
 0xc67   :  { %1223 = vrot.lane.b32.xlu1 %v1221_v2, %s3796_s3 }
 0xcd9   :  { %v1224_v4 = vpop.permute.xlu1 %1223 }
 0xcda   :  { %v1226_v5 = vadd.f32 %v1224_v4, %v1216_v3 }
 0xcdc   :  { %3694 = vtanh.f32 %v1226_v5 }
 0xce6   :  { %v3695_v6 = vpop.eup %3694 }
 0xce7   :  { %1229 = vrot.lane.b32.xlu0 %v3695_v6, %s3795_s27  ;;  %v1568_v6 = vld [vmem:[%s4627_s4] sm:$0xff] }
 0xd59   :  { %v1230_v7 = vpop.permute.xlu0 %1229 }
 0xd5a   :  { %v4074_v8 = vmul.f32 %v3693_v62, %v1230_v7 }
 0xd5c   :  { %1245 = vrot.lane.b32.xlu1 %v4074_v8, %s3796_s3  ;;  %v1240_v4 = vrot.slane %v4074_v8, %v4112_v57  ;;  %v1570_v8 = vld [vmem:[%s4627_s4 + $0x10] sm:$0xff] }
 0xdce   :  { %v1246_v9 = vpop.permute.xlu1 %1245 }
 0xdcf   :  { %3231 = vmatmul.mubr.msk.f32.vlgmr.msra.gmra.mrb[4].mxu1 %vm696_vm4, %v1246_v9 }
 0xdd0   :  { %3431 = vmatpush3.bf16.msra.mxu1 %v3941_v24  ;;  %3252 = vmatprep.mubr.msk.f32.mxu1 %vm3793_vm1, %v3792_v1 }
 0xdd1   :  { %3432 = vmatprep.subr.bf16.mxu1 %v3794_v25 }
 0xdd4   :  { %3434 = vmatpush3.bf16.msra.mxu1 %v3952_v28 }
 0xdd5   :  { %3499 = vmatprep.subr.bf16.mxu1 %v3794_v25 }
 0xea2   :  { %v1315_v10 = vpop.f32.mrb[4].mxu1 }
 0xea3   :  { %v3613_v11 = vadd.f32 %v3969_v31, %v1315_v10  ;;  %v3232_v12 = vpop.f32.mrb[5].mxu1  ;;  %v1573_v10 = vld [vmem:[%s4627_s4 + $0x28] sm:$0xff] }
 0xea5   :  { %3696 = vtanh.f32 %v3613_v11  ;;  %v2984_v0 = vmul.f32 -1.442695, %v3613_v11  ;;  %v1575_v11 = vld [vmem:[%s4627_s4 + $0x38] sm:$0xff] }
 0xea7   :  { %3698 = vpow2.f32 %v2984_v0  ;;  %v3439_v0 = vpack.c.bf16 %v1575_v11, %v1573_v10  ;;  %v1609_v10 = vld [vmem:[%s4627_s4 + $0x148] sm:$0xff]  ;;  %v1611_v11 = vld [vmem:[%s4627_s4 + $0x158] sm:$0xff] }
 0xeaf   :  { %v3697_v13 = vpop.eup %3696 }
 0xeb0   :  { %1329 = vrot.lane.b32.xlu0 %v3697_v13, %s3795_s27  ;;  %v3437_v13 = vpack.c.bf16 %v1570_v8, %v1568_v6  ;;  %v1606_v8 = vld [vmem:[%s4627_s4 + $0x130] sm:$0xff] }
 0xeb1   :  { %v3699_v24 = vpop.eup %3698 }
 0xeb2   :  { %v1323_v15 = vadd.f32 1.0, %v3699_v24  ;;  %v1572_v24 = vld [vmem:[%s4627_s4 + $0x20] sm:$0xff] }
 0xeb4   :  { %3700 = vrcp.f32 %v1323_v15  ;;  %v1574_v15 = vld [vmem:[%s4627_s4 + $0x30] sm:$0xff] }
 0xebe   :  { %v3701_v16 = vpop.eup %3700 }
 0xebf   :  { %v1327_v28 = vmul.f32 %v3701_v16, %v1226_v5  ;;  %v1571_v5 = vld [vmem:[%s4627_s4 + $0x18] sm:$0xff] }
 0xf22   :  { %v1330_v17 = vpop.permute.xlu0 %1329 }
 0xf23   :  { %v1332_v18 = vmul.f32 %v3701_v16, %v1330_v17  ;;  %v1579_v17 = vld [vmem:[%s4627_s4 + $0x58] sm:$0xff] }
 0xf25   :  { %1334 = vrot.lane.b32.xlu1 %v1332_v18, %s3796_s3  ;;  %v3441_v18 = vpack.c.bf16 %v1574_v15, %v1572_v24  ;;  %v1610_v24 = vld [vmem:[%s4627_s4 + $0x150] sm:$0xff]  ;;  %v1613_v15 = vld [vmem:[%s4627_s4 + $0x168] sm:$0xff] }
 0xf97   :  { %v1335_v19 = vpop.permute.xlu1 %1334 }
 0xf98   :  { %v1337_v20 = vadd.f32 %v1335_v19, %v1327_v28  ;;  %v1576_v19 = vld [vmem:[%s4627_s4 + $0x40] sm:$0xff] }
 0xf9a   :  { %3702 = vtanh.f32 %v1337_v20 }
 0xfa4   :  { %v3703_v21 = vpop.eup %3702 }
 0xfa5   :  { %1340 = vrot.lane.b32.xlu0 %v3703_v21, %s3795_s27  ;;  %v1026_v21 = vrot.slane %v4045_v35, %v4112_v57  ;;  %v1582_v35 = vld [vmem:[%s4627_s4 + $0x70] sm:$0xff] }
0x1017   :  { %v1341_v22 = vpop.permute.xlu0 %1340 }
0x1018   :  { %v4089_v23 = vmul.f32 %v3701_v16, %v1341_v22  ;;  %v1577_v16 = vld [vmem:[%s4627_s4 + $0x48] sm:$0xff] }
0x1019   :  { %v3443_v28 = vpack.c.bf16 %v1579_v17, %v1577_v16  ;;  %v1581_v22 = vld [vmem:[%s4627_s4 + $0x68] sm:$0xff]  ;;  %v1615_v16 = vld [vmem:[%s4627_s4 + $0x178] sm:$0xff] }
0x101a   :  { %1356 = vrot.lane.b32.xlu1 %v4089_v23, %s3796_s3  ;;  %v1351_v12 = vrot.slane %v4089_v23, %v4112_v57  ;;  %v1583_v23 = vld [vmem:[%s4627_s4 + $0x78] sm:$0xff] }
0x108c   :  { %v1357_v26 = vpop.permute.xlu1 %1356 }
0x108d   :  { %3242 = vmatmul.mubr.msk.f32.vlgmr.msra.gmra.mrb[6].mxu0 %vm696_vm4, %v1357_v26 }
0x1160   :  { %v1426_v27 = vpop.f32.mrb[6].mxu0 }
0x1161   :  { %v3614_v29 = vadd.f32 %v3969_v31, %v1426_v27  ;;  %v3243_v30 = vpop.f32.mrb[7].mxu0  ;;  %v3447_v27 = vpack.c.bf16 %v1583_v23, %v1581_v22  ;;  %v1619_v22 = vld [vmem:[%s4627_s4 + $0x198] sm:$0xff] }
0x1162   :  { %v1585_v30 = vld [vmem:[%s4627_s4 + $0x88] sm:$0xff] }
0x1163   :  { %3704 = vtanh.f32 %v3614_v29  ;;  %v2986_v33 = vmul.f32 -1.442695, %v3614_v29  ;;  %v1580_v29 = vld [vmem:[%s4627_s4 + $0x60] sm:$0xff] }
0x1165   :  { %3706 = vpow2.f32 %v2986_v33  ;;  %v3449_v33 = vpack.c.bf16 %v1582_v35, %v1580_v29  ;;  %v1618_v29 = vld [vmem:[%s4627_s4 + $0x190] sm:$0xff] }
0x116d   :  { %v3705_v32 = vpop.eup %3704 }
0x116e   :  { %1440 = vrot.lane.b32.xlu0 %v3705_v32, %s3795_s27  ;;  %v1587_v32 = vld [vmem:[%s4627_s4 + $0x98] sm:$0xff] }
0x116f   :  { %v3707_v34 = vpop.eup %3706 }
0x1170   :  { %v1434_v36 = vadd.f32 1.0, %v3707_v34  ;;  %v3451_v34 = vpack.c.bf16 %v1587_v32, %v1585_v30 }
0x1172   :  { %3708 = vrcp.f32 %v1434_v36  ;;  %v1584_v36 = vld [vmem:[%s4627_s4 + $0x80] sm:$0xff] }
0x117c   :  { %v3709_v37 = vpop.eup %3708 }
0x117d   :  { %v1438_v40 = vmul.f32 %v3709_v37, %v1337_v20  ;;  %v1578_v20 = vld [vmem:[%s4627_s4 + $0x50] sm:$0xff] }
0x117e   :  { %v3445_v26 = vpack.c.bf16 %v1578_v20, %v1576_v19  ;;  %v1614_v19 = vld [vmem:[%s4627_s4 + $0x170] sm:$0xff] }
0x11e0   :  { %v1441_v38 = vpop.permute.xlu0 %1440 }
0x11e1   :  { %v1443_v39 = vmul.f32 %v3709_v37, %v1441_v38  ;;  %v1589_v38 = vld [vmem:[%s4627_s4 + $0xa8] sm:$0xff] }
0x11e3   :  { %1445 = vrot.lane.b32.xlu1 %v1443_v39, %s3796_s3  ;;  %v1591_v39 = vld [vmem:[%s4627_s4 + $0xb8] sm:$0xff] }
0x1255   :  { %v1446_v41 = vpop.permute.xlu1 %1445 }
0x1256   :  { %v4097_v42 = vadd.f32 %v1446_v41, %v1438_v40  ;;  %v3455_v41 = vpack.c.bf16 %v1591_v39, %v1589_v38 }
0x1258   :  { %3710 = vtanh.f32 %v4097_v42 }
0x1262   :  { %v3711_v43 = vpop.eup %3710 }
0x1263   :  { %1451 = vrot.lane.b32.xlu0 %v3711_v43, %s3795_s27  ;;  %v1588_v43 = vld [vmem:[%s4627_s4 + $0xa0] sm:$0xff] }
0x12d5   :  { %v1452_v44 = vpop.permute.xlu0 %1451 }
0x12d6   :  { %v4101_v45 = vmul.f32 %v3709_v37, %v1452_v44  ;;  %v1586_v37 = vld [vmem:[%s4627_s4 + $0x90] sm:$0xff] }
0x12d7   :  { %v3453_v40 = vpack.c.bf16 %v1586_v37, %v1584_v36  ;;  %v1590_v44 = vld [vmem:[%s4627_s4 + $0xb0] sm:$0xff]  ;;  %v1620_v36 = vld [vmem:[%s4627_s4 + $0x1a0] sm:$0xff] }
0x12d8   :  { %1467 = vrot.lane.b32.xlu1 %v4101_v45, %s3796_s3  ;;  %v1622_v37 = vld [vmem:[%s4627_s4 + $0x1b0] sm:$0xff] }
0x12d9   :  { %v3489_v39 = vpack.c.bf16 %v1622_v37, %v1620_v36 }
0x134a   :  { %v1468_v46 = vpop.permute.xlu1 %1467 }
0x134b   :  { %3253 = vmatmul.mubr.msk.f32.vlgmr.msra.gmra.mrb[6].mxu1 %vm696_vm4, %v1468_v46  ;;  %v1593_v46 = vld [vmem:[%s4627_s4 + $0xc8] sm:$0xff] }
0x134c   :  { %3263 = vmatprep.mubr.msk.f32.mxu1 %vm3793_vm1, %v3792_v1 }
0x141e   :  { %v1537_v47 = vpop.f32.mrb[6].mxu1 }
0x141f   :  { %v3615_v49 = vadd.f32 %v3969_v31, %v1537_v47  ;;  %v3254_v50 = vpop.f32.mrb[7].mxu1  ;;  %v914_v31 = vrot.slane %v4030_v14, %v4112_v57  ;;  %v1569_v14 = vld [vmem:[%s4627_s4 + $0x8] sm:$0xff]  ;;  %v1595_v47 = vld [vmem:[%s4627_s4 + $0xd8] sm:$0xff] }
0x1420   :  { %v3435_v9 = vpack.c.bf16 %v1571_v5, %v1569_v14  ;;  %v3459_v50 = vpack.c.bf16 %v1595_v47, %v1593_v46  ;;  %v1605_v14 = vld [vmem:[%s4627_s4 + $0x128] sm:$0xff]  ;;  %v1607_v5 = vld [vmem:[%s4627_s4 + $0x138] sm:$0xff]  ;;  %v1626_v46 = vld [vmem:[%s4627_s4 + $0x1d0] sm:$0xff] }
0x1421   :  { %3712 = vtanh.f32 %v3615_v49  ;;  %v2988_v60 = vmul.f32 -1.442695, %v3615_v49  ;;  %v3457_v49 = vpack.c.bf16 %v1590_v44, %v1588_v43  ;;  %v1624_v43 = vld [vmem:[%s4627_s4 + $0x1c0] sm:$0xff]  ;;  %v1629_v47 = vld [vmem:[%s4627_s4 + $0x1e8] sm:$0xff] }
0x1422   :  { %3436 = vmatprep.subr.bf16.mxu0 %v3435_v9  ;;  %v1604_v9 = vld [vmem:[%s4627_s4 + $0x120] sm:$0xff] }
0x1423   :  { %3714 = vpow2.f32 %v2988_v60  ;;  %3438 = vmatpush1.bf16.msra.mxu0 %v3437_v13  ;;  %v1598_v60 = vld [vmem:[%s4627_s4 + $0xf0] sm:$0xff]  ;;  %v3475_v13 = vpack.c.bf16 %v1611_v11, %v1609_v10 }
0x1424   :  { %3440 = vmatprep.subr.bf16.mxu0 %v3439_v0  ;;  %v1608_v0 = vld [vmem:[%s4627_s4 + $0x140] sm:$0xff] }
0x1425   :  { %v3477_v17 = vpack.c.bf16 %v1610_v24, %v1608_v0 }
0x1427   :  { %3442 = vmatpush1.bf16.msra.mxu0 %v3441_v18  ;;  %v3479_v18 = vpack.c.bf16 %v1615_v16, %v1613_v15  ;;  %v48_v16 = vld [vmem:[%s4630_s7] sm:$0xff] }
0x1428   :  { %3444 = vmatprep.subr.bf16.mxu0 %v3443_v28  ;;  %v1612_v28 = vld [vmem:[%s4627_s4 + $0x160] sm:$0xff] }
0x1429   :  { %v3481_v20 = vpack.c.bf16 %v1614_v19, %v1612_v28  ;;  %v50_v28 = vld [vmem:[%s4630_s7 + $0x10] sm:$0xff]  ;;  %v51_v19 = vld [vmem:[%s4630_s7 + $0x18] sm:$0xff] }
0x142b   :  { %v3713_v58 = vpop.eup %3712  ;;  %3446 = vmatpush1.bf16.msra.mxu0 %v3445_v26 }
0x142c   :  { %1551 = vrot.lane.b32.xlu0 %v3713_v58, %s3795_s27  ;;  %3448 = vmatprep.subr.bf16.mxu0 %v3447_v27  ;;  %v3461_v58 = vpack.c.bf16 %v1594_v52, %v1592_v51  ;;  %v1616_v27 = vld [vmem:[%s4627_s4 + $0x180] sm:$0xff]  ;;  %v3493_v51 = vpack.c.bf16 %v1626_v46, %v1624_v43 }
0x142d   :  { %v3715_v61 = vpop.eup %3714  ;;  %v3485_v30 = vpack.c.bf16 %v1618_v29, %v1616_v27 }
0x142e   :  { %v1545_v62 = vadd.f32 1.0, %v3715_v61  ;;  %v1601_v61 = vld [vmem:[%s4627_s4 + $0x108] sm:$0xff] }
0x142f   :  { %3450 = vmatpush1.bf16.msra.mxu0 %v3449_v33  ;;  %v1621_v33 = vld [vmem:[%s4627_s4 + $0x1a8] sm:$0xff] }
0x1430   :  { %803 = vrot.lane.b32.xlu0 %v802_v59, %s3796_s3  ;;  %3716 = vrcp.f32 %v1545_v62  ;;  %3452 = vmatprep.subr.bf16.mxu0 %v3451_v34  ;;  %v3463_v59 = vpack.c.bf16 %v1599_v55, %v1597_v54  ;;  %v1603_v62 = vld [vmem:[%s4627_s4 + $0x118] sm:$0xff]  ;;  %v1628_v54 = vld [vmem:[%s4627_s4 + $0x1e0] sm:$0xff]  ;;  %v1630_v55 = vld [vmem:[%s4627_s4 + $0x1f0] sm:$0xff] }
0x1433   :  { %3454 = vmatpush1.bf16.msra.mxu0 %v3453_v40  ;;  %v1625_v40 = vld [vmem:[%s4627_s4 + $0x1c8] sm:$0xff] }
0x1434   :  { %915 = vrot.lane.b32.xlu0 %v914_v31, %s3795_s27  ;;  %3456 = vmatprep.subr.bf16.mxu0 %v3455_v41  ;;  %v1596_v31 = vld [vmem:[%s4627_s4 + $0xe0] sm:$0xff]  ;;  %v1627_v41 = vld [vmem:[%s4627_s4 + $0x1d8] sm:$0xff] }
0x1435   :  { %v3491_v44 = vpack.c.bf16 %v1627_v41, %v1625_v40 }
0x1437   :  { %3458 = vmatpush1.bf16.msra.mxu0 %v3457_v49  ;;  %v1631_v49 = vld [vmem:[%s4627_s4 + $0x1f8] sm:$0xff] }
0x1438   :  { %3460 = vmatprep.subr.bf16.mxu0 %v3459_v50  ;;  %v3495_v52 = vpack.c.bf16 %v1631_v49, %v1629_v47 }
0x143a   :  { %v4121_v63 = vpop.eup %3716 }
0x143b   :  { %3462 = vmatpush1.bf16.msra.mxu0 %v3461_v58  ;;  %v1549_v23 = vmul.f32 %v4121_v63, %v4097_v42  ;;  %v1623_v42 = vld [vmem:[%s4627_s4 + $0x1b8] sm:$0xff]  ;;  %v3497_v58 = vpack.c.bf16 %v1630_v55, %v1628_v54 }
0x143c   :  { %3464 = vmatprep.subr.bf16.mxu0 %v3463_v59  ;;  %v3487_v34 = vpack.c.bf16 %v1623_v42, %v1621_v33 }
0x149e   :  { %v1552_v2 = vpop.permute.xlu0 %1551 }
0x149f   :  { %v1554_v3 = vmul.f32 %v4121_v63, %v1552_v2  ;;  %v3465_v2 = vpack.c.bf16 %v1598_v60, %v1596_v31  ;;  %v1462_v60 = vrot.slane %v4101_v45, %v4112_v57 }
0x14a1   :  { %1556 = vrot.lane.b32.xlu1 %v1554_v3, %s3796_s3  ;;  %v3467_v3 = vpack.c.bf16 %v1603_v62, %v1601_v61  ;;  %3466 = vmatpush1.bf16.msra.mxu0 %v3465_v2  ;;  %v44_v61 = vld [vmem:[%s4629_s6] sm:$0xff]  ;;  %v45_v62 = vld [vmem:[%s4629_s6 + $0x8] sm:$0xff] }
0x14a2   :  { %v804_v48 = vpop.permute.xlu0 %803  ;;  %v3500_v2 = vpack.c.bf16 %v45_v62, %v44_v61 }
0x14a3   :  { %807 = vst.msk [vmem:[#allocation2] sm:$0x3] %vm806_vm5, %v804_v48  ;;  %v1600_v48 = vld [vmem:[%s4627_s4 + $0x100] sm:$0xff]  ;;  %3468 = vmatprep.subr.bf16.mxu0 %v3467_v3 }
0x14a4   :  { %3501 = vmatpush3.bf16.msra.mxu1 %v3500_v2 }
0x14a5   :  { %1241 = vrot.lane.b32.xlu1 %v1240_v4, %s3796_s3  ;;  %v1602_v4 = vld [vmem:[%s4627_s4 + $0x110] sm:$0xff]  ;;  %3502 = vmatprep.subr.bf16.mxu1 %v3794_v25 }
0x14a6   :  { %v916_v7 = vpop.permute.xlu0 %915  ;;  %v3469_v6 = vpack.c.bf16 %v1602_v4, %v1600_v48 }
0x14a7   :  { %919 = vst.msk [vmem:[#allocation2] sm:$0x3] %vm918_vm6, %v916_v7  ;;  %v3471_v7 = vpack.c.bf16 %v1607_v5, %v1605_v14  ;;  %v46_v14 = vld [vmem:[%s4629_s6 + $0x10] sm:$0xff]  ;;  %v47_v5 = vld [vmem:[%s4629_s6 + $0x18] sm:$0xff] }
0x14a8   :  { %3470 = vmatpush1.bf16.msra.mxu0 %v3469_v6  ;;  %v3503_v6 = vpack.c.bf16 %v47_v5, %v46_v14 }
0x14a9   :  { %1352 = vrot.lane.b32.xlu1 %v1351_v12, %s3795_s27  ;;  %v3473_v12 = vpack.c.bf16 %v1606_v8, %v1604_v9  ;;  %3472 = vmatprep.subr.bf16.mxu0 %v3471_v7  ;;  %v1632_v7 = vld [vmem:[%s4628_s5] sm:$0x3]  ;;  %v1640_v8 = vsub.s32 1, %v4109_v56 }
0x14aa   :  { %3504 = vmatpush3.bf16.msra.mxu1 %v3503_v6 }
0x14ab   :  { %3505 = vmatprep.subr.bf16.mxu1 %v3794_v25 }
0x14ac   :  { %3474 = vmatpush1.bf16.msra.mxu0 %v3473_v12  ;;  %v1641_v12 = vrot.slane %v1632_v7, %v1640_v8 }
0x14ad   :  { %1027 = vrot.lane.b32.xlu1 %v1026_v21, %s3798_s2  ;;  %3476 = vmatprep.subr.bf16.mxu0 %v3475_v13  ;;  %v1617_v21 = vld [vmem:[%s4627_s4 + $0x188] sm:$0xff] }
0x14ae   :  { %v3483_v26 = vpack.c.bf16 %v1619_v22, %v1617_v21  ;;  %v4411_v21 = vpack.c.bf16 %v51_v19, %v50_v28 }
0x14b0   :  { %3478 = vmatpush1.bf16.msra.mxu0 %v3477_v17  ;;  %v49_v17 = vld [vmem:[%s4630_s7 + $0x8] sm:$0xff] }
0x14b1   :  { %3480 = vmatprep.subr.bf16.mxu0 %v3479_v18  ;;  %v4400_v18 = vpack.c.bf16 %v49_v17, %v48_v16 }
0x14b4   :  { %3482 = vmatpush1.bf16.msra.mxu0 %v3481_v20 }
0x14b5   :  { %3484 = vmatprep.subr.bf16.mxu0 %v3483_v26 }
0x14b8   :  { %3486 = vmatpush1.bf16.msra.mxu0 %v3485_v30 }
0x14b9   :  { %3488 = vmatprep.subr.bf16.mxu0 %v3487_v34 }
0x14bc   :  { %3490 = vmatpush1.bf16.msra.mxu0 %v3489_v39 }
0x14bd   :  { %3492 = vmatprep.subr.bf16.mxu0 %v3491_v44 }
0x14c0   :  { %3494 = vmatpush1.bf16.msra.mxu0 %v3493_v51 }
0x14c1   :  { %3496 = vmatprep.subr.bf16.mxu0 %v3495_v52 }
0x14c4   :  { %3498 = vmatpush1.bf16.msra.mxu0 %v3497_v58 }
0x14c5   :  { %3571 = vmatprep.subr.bf16.mxu0 %v3794_v25 }
0x1513   :  { %v1557_v35 = vpop.permute.xlu1 %1556 }
0x1514   :  { %v4294_v32 = vadd.f32 %v1557_v35, %v1549_v23  ;;  %v4428_v23 = vld [vmem:[%s4631_s8] ss:$0 sm:$0xff] }
0x1516   :  { %3718 = vtanh.f32 %v4294_v32 }
0x1517   :  { %v1242_v38 = vpop.permute.xlu1 %1241 }
0x1518   :  { %1244 = vst.msk [vmem:[#allocation2 + $0x2] sm:$0x3] %vm806_vm5, %v1242_v38 }
0x151b   :  { %v1353_v50 = vpop.permute.xlu1 %1352 }
0x151c   :  { %1355 = vst.msk [vmem:[#allocation2 + $0x2] sm:$0x3] %vm918_vm6, %v1353_v50 }
0x151f   :  { %v1028_v59 = vpop.permute.xlu1 %1027 }
0x1520   :  { %v3719_v31 = vpop.eup %3718  ;;  %1031 = vst.msk [vmem:[#allocation2] sm:$0x3] %vm1030_vm7, %v1028_v59 }
0x1521   :  { %1132 = vst.msk [vmem:[#allocation2] sm:$0x3] %vm1131_vm8, %v4060_v53  ;;  %1562 = vrot.lane.b32.xlu0 %v3719_v31, %s3795_s27 }
0x1525   :  { %1463 = vrot.lane.b32.xlu0 %v1462_v60, %s3798_s2 }
0x1593   :  { %v1563_v53 = vpop.permute.xlu0 %1562 }
0x1594   :  { %v1565_v3 = vmul.f32 %v4121_v63, %v1563_v53  ;;  %v1636_v63 = vsub.s32 0, %v4109_v56 }
0x1596   :  { %v1637_v9 = vrot.slane %v1632_v7, %v1636_v63 }
0x1597   :  { %v1464_v48 = vpop.permute.xlu0 %1463 }
0x1598   :  { %1466 = vst.msk [vmem:[#allocation2 + $0x2] sm:$0x3] %vm1030_vm7, %v1464_v48 }
0x1599   :  { %1566 = vst.msk [vmem:[#allocation2 + $0x2] sm:$0x3] %vm1131_vm8, %v1565_v3 }
0x15a0   :  { %v2989_v45 = vld.sshfl [vmem:[#allocation2] sm:$0x33 pattern:$0x76325410] }
0x15a1   :  { %v1652_v4 = vcombine.high %v2989_v45, %v2989_v45 }
0x15a3   :  { %1719 = vmatprep.mubr.f32.mxu0 %v1652_v4 }
0x15a4   :  { %1720 = vmatmul.mubr.f32.vlgmr.msra.gmra.mrb[8].mxu0 %v2989_v45 }
0x1677   :  { %v1721_v10 = vpop.f32.mrb[8].mxu0 }
0x1678   :  { %v1722_v11 = vadd.f32 %v1721_v10, %v1637_v9  ;;  %v1723_v13 = vpop.f32.mrb[9].mxu0 }
0x1679   :  { %v1724_v0 = vadd.f32 %v1723_v13, %v1641_v12 }
0x167a   :  { %1873 = vrot.lane.b32.xlu0 %v1722_v11, %s3795_s27  ;;  %1799 = vrot.lane.b32.xlu1 %v1722_v11, %s3798_s2 }
0x167b   :  { %3264 = vmatmul.mubr.msk.f32.vlgmr.msra.gmra.mrb[10].mxu1 %vm696_vm4, %v1722_v11 }
0x167c   :  { %3507 = vmatpush3.bf16.msra.mxu1 %v3500_v2  ;;  %3274 = vmatprep.mubr.msk.f32.mxu1 %vm3793_vm1, %v3792_v1 }
0x167d   :  { %3508 = vmatprep.subr.bf16.mxu1 %v3794_v25 }
0x167e   :  { %2094 = vrot.lane.b32.xlu0 %v1724_v0, %s3798_s2  ;;  %1947 = vrot.lane.b32.xlu1 %v1722_v11, %s3796_s3 }
0x1680   :  { %3510 = vmatpush3.bf16.msra.mxu1 %v3503_v6 }
0x1681   :  { %3511 = vmatprep.subr.bf16.mxu1 %v3794_v25 }
0x1682   :  { %2169 = vrot.lane.b32.xlu1 %v1565_v3, %s3796_s3 }
0x16ec   :  { %v1800_v56 = vpop.permute.xlu1 %1799  ;;  %v1874_v24 = vpop.permute.xlu0 %1873 }
0x16ed   :  { %3275 = vmatmul.mubr.msk.f32.vlgmr.msra.gmra.mrb[12].mxu1 %vm696_vm4, %v1800_v56 }
0x16ee   :  { %3513 = vmatpush3.bf16.msra.mxu1 %v3500_v2  ;;  %3285 = vmatprep.mubr.msk.f32.mxu1 %vm3793_vm1, %v3792_v1 }
0x16ef   :  { %3514 = vmatprep.subr.bf16.mxu1 %v3794_v25 }
0x16f0   :  { %v1948_v15 = vpop.permute.xlu1 %1947  ;;  %v2095_v20 = vpop.permute.xlu0 %2094 }
0x16f2   :  { %3516 = vmatpush3.bf16.msra.mxu1 %v3503_v6 }
0x16f3   :  { %3517 = vmatprep.subr.bf16.mxu1 %v3794_v25 }
0x16f4   :  { %v2170_v22 = vpop.permute.xlu1 %2169 }
0x16f5   :  { %3286 = vmatmul.mubr.msk.f32.vlgmr.msra.gmra.mrb[14].mxu1 %vm696_vm4, %v1874_v24 }
0x16f6   :  { %3519 = vmatpush3.bf16.msra.mxu1 %v3500_v2  ;;  %3296 = vmatprep.mubr.msk.f32.mxu1 %vm3793_vm1, %v3792_v1 }
0x16f7   :  { %3520 = vmatprep.subr.bf16.mxu1 %v3794_v25 }
0x16fa   :  { %3522 = vmatpush3.bf16.msra.mxu1 %v3503_v6 }
0x16fb   :  { %3523 = vmatprep.subr.bf16.mxu1 %v3794_v25 }
0x16fd   :  { %3297 = vmatmul.mubr.msk.f32.vlgmr.msra.gmra.mrb[16].mxu1 %vm696_vm4, %v1948_v15 }
0x16fe   :  { %3525 = vmatpush3.bf16.msra.mxu1 %v3500_v2  ;;  %3307 = vmatprep.mubr.msk.f32.mxu1 %vm3793_vm1, %v3792_v1 }
0x16ff   :  { %3526 = vmatprep.subr.bf16.mxu1 %v3794_v25 }
0x1702   :  { %3528 = vmatpush3.bf16.msra.mxu1 %v3503_v6 }
0x1703   :  { %3529 = vmatprep.subr.bf16.mxu1 %v3794_v25 }
0x1705   :  { %3308 = vmatmul.mubr.msk.f32.vlgmr.msra.gmra.mrb[18].mxu1 %vm696_vm4, %v1724_v0 }
0x1706   :  { %3531 = vmatpush3.bf16.msra.mxu1 %v3500_v2  ;;  %3318 = vmatprep.mubr.msk.f32.mxu1 %vm3793_vm1, %v3792_v1 }
0x1707   :  { %3532 = vmatprep.subr.bf16.mxu1 %v3794_v25 }
0x170a   :  { %3534 = vmatpush3.bf16.msra.mxu1 %v3503_v6 }
0x170b   :  { %3535 = vmatprep.subr.bf16.mxu1 %v3794_v25 }
0x170d   :  { %3319 = vmatmul.mubr.msk.f32.vlgmr.msra.gmra.mrb[20].mxu1 %vm696_vm4, %v2095_v20 }
0x170e   :  { %3537 = vmatpush3.bf16.msra.mxu1 %v4400_v18  ;;  %3329 = vmatprep.mubr.msk.f32.mxu1 %vm3793_vm1, %v3792_v1 }
0x170f   :  { %3538 = vmatprep.subr.bf16.mxu1 %v3794_v25 }
0x1712   :  { %3540 = vmatpush3.bf16.msra.mxu1 %v4411_v21 }
0x1713   :  { %3541 = vmatprep.subr.bf16.mxu1 %v3794_v25 }
0x1715   :  { %3330 = vmatmul.mubr.msk.f32.vlgmr.msra.gmra.mrb[10].mxu1 %vm696_vm4, %v2170_v22 }
0x1716   :  { %3543 = vmatpush3.bf16.msra.mxu1 %v4400_v18  ;;  %3340 = vmatprep.mubr.msk.f32.mxu1 %vm3793_vm1, %v3792_v1 }
0x1717   :  { %3544 = vmatprep.subr.bf16.mxu1 %v3794_v25 }
0x171a   :  { %3546 = vmatpush3.bf16.msra.mxu1 %v4411_v21 }
0x171b   :  { %3547 = vmatprep.subr.bf16.mxu1 %v3794_v25 }
0x17e8   :  { %v2239_v26 = vpop.f32.mrb[10].mxu1 }
0x17e9   :  { %v3616_v27 = vadd.f32 %v4428_v23, %v2239_v26  ;;  %v3331_v29 = vpop.f32.mrb[11].mxu1 }
0x17eb   :  { %3720 = vtanh.f32 %v3616_v27  ;;  %v2997_v30 = vmul.f32 -1.442695, %v3616_v27 }
0x17ed   :  { %3722 = vpow2.f32 %v2997_v30 }
0x17f5   :  { %v3721_v35 = vpop.eup %3720 }
0x17f6   :  { %2253 = vrot.lane.b32.xlu0 %v3721_v35, %s3795_s27 }
0x17f7   :  { %v3723_v33 = vpop.eup %3722 }
0x17f8   :  { %v2247_v42 = vadd.f32 1.0, %v3723_v33 }
0x17fa   :  { %3724 = vrcp.f32 %v2247_v42 }
0x1804   :  { %v3725_v34 = vpop.eup %3724 }
0x1805   :  { %v2251_v38 = vmul.f32 %v3725_v34, %v4294_v32 }
0x1868   :  { %v2254_v36 = vpop.permute.xlu0 %2253 }
0x1869   :  { %v2256_v37 = vmul.f32 %v3725_v34, %v2254_v36 }
0x186b   :  { %2258 = vrot.lane.b32.xlu1 %v2256_v37, %s3796_s3 }
0x18dd   :  { %v2259_v39 = vpop.permute.xlu1 %2258 }
0x18de   :  { %v2261_v40 = vadd.f32 %v2259_v39, %v2251_v38 }
0x18e0   :  { %3726 = vtanh.f32 %v2261_v40 }
0x18ea   :  { %v3727_v41 = vpop.eup %3726 }
0x18eb   :  { %2264 = vrot.lane.b32.xlu0 %v3727_v41, %s3795_s27 }
0x195d   :  { %v2265_v43 = vpop.permute.xlu0 %2264 }
0x195e   :  { %v4435_v44 = vmul.f32 %v3725_v34, %v2265_v43 }
0x1960   :  { %2280 = vrot.lane.b32.xlu1 %v4435_v44, %s3796_s3 }
0x19d2   :  { %v2281_v46 = vpop.permute.xlu1 %2280 }
0x19d3   :  { %3341 = vmatmul.mubr.msk.f32.vlgmr.msra.gmra.mrb[12].mxu1 %vm696_vm4, %v2281_v46 }
0x19d4   :  { %3549 = vmatpush3.bf16.msra.mxu1 %v4400_v18  ;;  %3351 = vmatprep.mubr.msk.f32.mxu1 %vm3793_vm1, %v3792_v1 }
0x19d5   :  { %3550 = vmatprep.subr.bf16.mxu1 %v3794_v25 }
0x19d8   :  { %3552 = vmatpush3.bf16.msra.mxu1 %v4411_v21 }
0x19d9   :  { %3553 = vmatprep.subr.bf16.mxu1 %v3794_v25 }
0x1aa6   :  { %v2350_v32 = vpop.f32.mrb[12].mxu1 }
0x1aa7   :  { %v3617_v47 = vadd.f32 %v4428_v23, %v2350_v32  ;;  %v3342_v49 = vpop.f32.mrb[13].mxu1 }
0x1aa9   :  { %3728 = vtanh.f32 %v3617_v47  ;;  %v2999_v51 = vmul.f32 -1.442695, %v3617_v47 }
0x1aab   :  { %3730 = vpow2.f32 %v2999_v51 }
0x1ab3   :  { %v3729_v50 = vpop.eup %3728 }
0x1ab4   :  { %2364 = vrot.lane.b32.xlu0 %v3729_v50, %s3795_s27 }
0x1ab5   :  { %v3731_v52 = vpop.eup %3730 }
0x1ab6   :  { %v2358_v54 = vadd.f32 1.0, %v3731_v52 }
0x1ab8   :  { %3732 = vrcp.f32 %v2358_v54 }
0x1ac2   :  { %v3733_v55 = vpop.eup %3732 }
0x1ac3   :  { %v2362_v31 = vmul.f32 %v3733_v55, %v2261_v40 }
0x1b26   :  { %v2365_v58 = vpop.permute.xlu0 %2364 }
0x1b27   :  { %v2367_v59 = vmul.f32 %v3733_v55, %v2365_v58 }
0x1b29   :  { %2369 = vrot.lane.b32.xlu1 %v2367_v59, %s3796_s3 }
0x1b9b   :  { %v2370_v60 = vpop.permute.xlu1 %2369 }
0x1b9c   :  { %v2372_v61 = vadd.f32 %v2370_v60, %v2362_v31 }
0x1b9e   :  { %3734 = vtanh.f32 %v2372_v61 }
0x1ba8   :  { %v3735_v62 = vpop.eup %3734 }
0x1ba9   :  { %2375 = vrot.lane.b32.xlu0 %v3735_v62, %s3795_s27 }
0x1c1b   :  { %v2376_v2 = vpop.permute.xlu0 %2375 }
0x1c1c   :  { %v4450_v53 = vmul.f32 %v3733_v55, %v2376_v2 }
0x1c1e   :  { %2391 = vrot.lane.b32.xlu1 %v4450_v53, %s3796_s3 }
0x1c90   :  { %v2392_v3 = vpop.permute.xlu1 %2391 }
0x1c91   :  { %3352 = vmatmul.mubr.msk.f32.vlgmr.msra.gmra.mrb[14].mxu1 %vm696_vm4, %v2392_v3 }
0x1c92   :  { %3555 = vmatpush3.bf16.msra.mxu1 %v4400_v18  ;;  %3362 = vmatprep.mubr.msk.f32.mxu1 %vm3793_vm1, %v3792_v1 }
0x1c93   :  { %3556 = vmatprep.subr.bf16.mxu1 %v3794_v25 }
0x1c96   :  { %3558 = vmatpush3.bf16.msra.mxu1 %v4411_v21 }
0x1c97   :  { %3559 = vmatprep.subr.bf16.mxu1 %v3794_v25 }
0x1d64   :  { %v2461_v48 = vpop.f32.mrb[14].mxu1 }
0x1d65   :  { %v3618_v45 = vadd.f32 %v4428_v23, %v2461_v48  ;;  %v3353_v4 = vpop.f32.mrb[15].mxu1 }
0x1d67   :  { %3736 = vtanh.f32 %v3618_v45  ;;  %v3001_v5 = vmul.f32 -1.442695, %v3618_v45 }
0x1d69   :  { %3738 = vpow2.f32 %v3001_v5 }
0x1d71   :  { %v3737_v14 = vpop.eup %3736 }
0x1d72   :  { %2475 = vrot.lane.b32.xlu0 %v3737_v14, %s3795_s27 }
0x1d73   :  { %v3739_v6 = vpop.eup %3738 }
0x1d74   :  { %v2469_v63 = vadd.f32 1.0, %v3739_v6 }
0x1d76   :  { %3740 = vrcp.f32 %v2469_v63 }
0x1d80   :  { %v3741_v7 = vpop.eup %3740 }
0x1d81   :  { %v2473_v10 = vmul.f32 %v3741_v7, %v2372_v61 }
0x1de4   :  { %v2476_v9 = vpop.permute.xlu0 %2475 }
0x1de5   :  { %v2478_v8 = vmul.f32 %v3741_v7, %v2476_v9  ;;  %v2828_v9 = vld [vmem:[%s4632_s9 + $0x10] sm:$0xff] }
0x1de7   :  { %2480 = vrot.lane.b32.xlu1 %v2478_v8, %s3796_s3 }
0x1e59   :  { %v2481_v11 = vpop.permute.xlu1 %2480 }
0x1e5a   :  { %v2483_v12 = vadd.f32 %v2481_v11, %v2473_v10  ;;  %v2829_v10 = vld [vmem:[%s4632_s9 + $0x18] sm:$0xff] }
0x1e5b   :  { %v3575_v11 = vpack.c.bf16 %v2829_v10, %v2828_v9 }
0x1e5c   :  { %3742 = vtanh.f32 %v2483_v12 }
0x1e66   :  { %v3743_v13 = vpop.eup %3742 }
0x1e67   :  { %2486 = vrot.lane.b32.xlu0 %v3743_v13, %s3795_s27  ;;  %v2830_v13 = vld [vmem:[%s4632_s9 + $0x20] sm:$0xff] }
0x1ed9   :  { %v2487_v0 = vpop.permute.xlu0 %2486 }
0x1eda   :  { %v4465_v56 = vmul.f32 %v3741_v7, %v2487_v0  ;;  %v2826_v7 = vld [vmem:[%s4632_s9] sm:$0xff]  ;;  %v2831_v0 = vld [vmem:[%s4632_s9 + $0x28] sm:$0xff] }
0x1edc   :  { %2502 = vrot.lane.b32.xlu1 %v4465_v56, %s3796_s3  ;;  %v2497_v4 = vrot.slane %v4465_v56, %v4112_v57  ;;  %v2386_v56 = vrot.slane %v4450_v53, %v4112_v57  ;;  %v2834_v53 = vld [vmem:[%s4632_s9 + $0x40] sm:$0xff] }
0x1f4e   :  { %v2503_v24 = vpop.permute.xlu1 %2502 }
0x1f4f   :  { %3363 = vmatmul.mubr.msk.f32.vlgmr.msra.gmra.mrb[16].mxu1 %vm696_vm4, %v2503_v24  ;;  %v3578_v24 = vpack.c.bf16 %v2831_v0, %v2830_v13 }
0x1f50   :  { %3561 = vmatpush3.bf16.msra.mxu1 %v4400_v18  ;;  %3373 = vmatprep.mubr.msk.f32.mxu1 %vm3793_vm1, %v3792_v1 }
0x1f51   :  { %3562 = vmatprep.subr.bf16.mxu1 %v3794_v25 }
0x1f54   :  { %3564 = vmatpush3.bf16.msra.mxu1 %v4411_v21 }
0x1f55   :  { %3565 = vmatprep.subr.bf16.mxu1 %v3794_v25 }
0x2022   :  { %v2572_v15 = vpop.f32.mrb[16].mxu1 }
0x2023   :  { %v3619_v16 = vadd.f32 %v4428_v23, %v2572_v15  ;;  %v3364_v17 = vpop.f32.mrb[17].mxu1  ;;  %v2832_v15 = vld [vmem:[%s4632_s9 + $0x30] sm:$0xff] }
0x2025   :  { %3744 = vtanh.f32 %v3619_v16  ;;  %v3003_v19 = vmul.f32 -1.442695, %v3619_v16  ;;  %v2833_v16 = vld [vmem:[%s4632_s9 + $0x38] sm:$0xff] }
0x2027   :  { %3746 = vpow2.f32 %v3003_v19  ;;  %v2835_v19 = vld [vmem:[%s4632_s9 + $0x48] sm:$0xff] }
0x202f   :  { %v3745_v28 = vpop.eup %3744 }
0x2030   :  { %2586 = vrot.lane.b32.xlu0 %v3745_v28, %s3795_s27  ;;  %v3581_v28 = vpack.c.bf16 %v2833_v16, %v2832_v15 }
0x2031   :  { %v3747_v20 = vpop.eup %3746 }
0x2032   :  { %v2580_v22 = vadd.f32 1.0, %v3747_v20  ;;  %v3584_v20 = vpack.c.bf16 %v2835_v19, %v2834_v53 }
0x2034   :  { %3748 = vrcp.f32 %v2580_v22  ;;  %v2836_v22 = vld [vmem:[%s4632_s9 + $0x50] sm:$0xff] }
0x203e   :  { %v3749_v26 = vpop.eup %3748 }
0x203f   :  { %v2584_v35 = vmul.f32 %v3749_v26, %v2483_v12 }
0x20a2   :  { %v2587_v27 = vpop.permute.xlu0 %2586 }
0x20a3   :  { %v2589_v29 = vmul.f32 %v3749_v26, %v2587_v27 }
0x20a5   :  { %2591 = vrot.lane.b32.xlu1 %v2589_v29, %s3796_s3  ;;  %v2838_v29 = vld [vmem:[%s4632_s9 + $0x60] sm:$0xff] }
0x2117   :  { %v2592_v30 = vpop.permute.xlu1 %2591 }
0x2118   :  { %v2594_v33 = vadd.f32 %v2592_v30, %v2584_v35  ;;  %v2839_v35 = vld [vmem:[%s4632_s9 + $0x68] sm:$0xff] }
0x2119   :  { %v3590_v30 = vpack.c.bf16 %v2839_v35, %v2838_v29 }
0x211a   :  { %3750 = vtanh.f32 %v2594_v33 }
0x2124   :  { %v3751_v42 = vpop.eup %3750 }
0x2125   :  { %2597 = vrot.lane.b32.xlu0 %v3751_v42, %s3795_s27  ;;  %v2841_v42 = vld [vmem:[%s4632_s9 + $0x78] sm:$0xff] }
0x2197   :  { %v2598_v34 = vpop.permute.xlu0 %2597 }
0x2198   :  { %v4480_v36 = vmul.f32 %v3749_v26, %v2598_v34  ;;  %v2837_v26 = vld [vmem:[%s4632_s9 + $0x58] sm:$0xff] }
0x2199   :  { %v3587_v27 = vpack.c.bf16 %v2837_v26, %v2836_v22 }
0x219a   :  { %2603 = vrot.lane.b32.xlu1 %v4480_v36, %s3796_s3 }
0x220c   :  { %v2604_v37 = vpop.permute.xlu1 %2603 }
0x220d   :  { %3374 = vmatmul.mubr.msk.f32.vlgmr.msra.gmra.mrb[18].mxu1 %vm696_vm4, %v2604_v37  ;;  %v2842_v37 = vld [vmem:[%s4632_s9 + $0x80] sm:$0xff] }
0x220e   :  { %3567 = vmatpush3.bf16.msra.mxu1 %v4400_v18  ;;  %3384 = vmatprep.mubr.msk.f32.mxu1 %vm3793_vm1, %v3792_v1 }
0x220f   :  { %3568 = vmatprep.subr.bf16.mxu1 %v3794_v25 }
0x2212   :  { %3570 = vmatpush3.bf16.msra.mxu1 %v4411_v21 }
0x22e0   :  { %v2673_v38 = vpop.f32.mrb[18].mxu1 }
0x22e1   :  { %v3620_v39 = vadd.f32 %v4428_v23, %v2673_v38  ;;  %v3375_v40 = vpop.f32.mrb[19].mxu1  ;;  %v2843_v38 = vld [vmem:[%s4632_s9 + $0x88] sm:$0xff] }
0x22e2   :  { %v2844_v40 = vld [vmem:[%s4632_s9 + $0x90] sm:$0xff] }
0x22e3   :  { %3752 = vtanh.f32 %v3620_v39  ;;  %v3005_v43 = vmul.f32 -1.442695, %v3620_v39  ;;  %v3596_v39 = vpack.c.bf16 %v2843_v38, %v2842_v37 }
0x22e5   :  { %3754 = vpow2.f32 %v3005_v43 }
0x22ed   :  { %v3753_v41 = vpop.eup %3752 }
0x22ee   :  { %2687 = vrot.lane.b32.xlu0 %v3753_v41, %s3795_s27  ;;  %v2845_v41 = vld [vmem:[%s4632_s9 + $0x98] sm:$0xff] }
0x22ef   :  { %v3755_v46 = vpop.eup %3754  ;;  %v3599_v43 = vpack.c.bf16 %v2845_v41, %v2844_v40 }
0x22f0   :  { %v2681_v32 = vadd.f32 1.0, %v3755_v46  ;;  %v2846_v46 = vld [vmem:[%s4632_s9 + $0xa0] sm:$0xff] }
0x22f2   :  { %3756 = vrcp.f32 %v2681_v32  ;;  %v2847_v32 = vld [vmem:[%s4632_s9 + $0xa8] sm:$0xff] }
0x22fc   :  { %v3757_v18 = vpop.eup %3756 }
0x22fd   :  { %v2685_v49 = vmul.f32 %v3757_v18, %v2594_v33  ;;  %v2840_v33 = vld [vmem:[%s4632_s9 + $0x70] sm:$0xff] }
0x22fe   :  { %v3593_v34 = vpack.c.bf16 %v2841_v42, %v2840_v33 }
0x2360   :  { %v2688_v47 = vpop.permute.xlu0 %2687 }
0x2361   :  { %v2690_v1 = vmul.f32 %v3757_v18, %v2688_v47  ;;  %v2848_v47 = vld [vmem:[%s4632_s9 + $0xb0] sm:$0xff] }
0x2363   :  { %2692 = vrot.lane.b32.xlu1 %v2690_v1, %s3796_s3  ;;  %v2849_v1 = vld [vmem:[%s4632_s9 + $0xb8] sm:$0xff] }
0x23d5   :  { %v2693_v21 = vpop.permute.xlu1 %2692 }
0x23d6   :  { %v2695_v50 = vadd.f32 %v2693_v21, %v2685_v49  ;;  %v3605_v49 = vpack.c.bf16 %v2849_v1, %v2848_v47 }
0x23d8   :  { %3758 = vtanh.f32 %v2695_v50 }
0x23e2   :  { %v3759_v51 = vpop.eup %3758 }
0x23e3   :  { %2698 = vrot.lane.b32.xlu0 %v3759_v51, %s3795_s27 }
0x2455   :  { %v2699_v52 = vpop.permute.xlu0 %2698 }
0x2456   :  { %v2701_v54 = vmul.f32 %v3757_v18, %v2699_v52  ;;  %v3602_v18 = vpack.c.bf16 %v2847_v32, %v2846_v46 }
0x2458   :  { %2714 = vrot.lane.b32.xlu1 %v2701_v54, %s3796_s3  ;;  %v2709_v17 = vrot.slane %v2701_v54, %v4112_v57 }
0x24ca   :  { %v2715_v55 = vpop.permute.xlu1 %2714 }
0x24cb   :  { %3385 = vmatmul.mubr.msk.f32.vlgmr.msra.gmra.mrb[20].mxu1 %vm696_vm4, %v2715_v55 }
0x259e   :  { %v2784_v58 = vpop.f32.mrb[20].mxu1 }
0x259f   :  { %v3621_v59 = vadd.f32 %v4428_v23, %v2784_v58  ;;  %v3386_v31 = vpop.f32.mrb[21].mxu1  ;;  %v2275_v23 = vrot.slane %v4435_v44, %v4112_v57  ;;  %v2827_v44 = vld [vmem:[%s4632_s9 + $0x8] sm:$0xff] }
0x25a0   :  { %v3572_v8 = vpack.c.bf16 %v2827_v44, %v2826_v7 }
0x25a1   :  { %3760 = vtanh.f32 %v3621_v59  ;;  %v3007_v61 = vmul.f32 -1.442695, %v3621_v59  ;;  %v3008_v59 = vld [vmem:[%s4633_s10] ss:$0 sm:$0xff] }
0x25a2   :  { %3573 = vmatpush1.bf16.msra.mxu0 %v3572_v8 }
0x25a3   :  { %3762 = vpow2.f32 %v3007_v61  ;;  %3574 = vmatprep.subr.bf16.mxu0 %v3794_v25 }
0x25a6   :  { %3576 = vmatpush1.bf16.msra.mxu0 %v3575_v11 }
0x25a7   :  { %3577 = vmatprep.subr.bf16.mxu0 %v3794_v25 }
0x25aa   :  { %3579 = vmatpush1.bf16.msra.mxu0 %v3578_v24 }
0x25ab   :  { %v3761_v60 = vpop.eup %3760  ;;  %3580 = vmatprep.subr.bf16.mxu0 %v3794_v25 }
0x25ac   :  { %2798 = vrot.lane.b32.xlu0 %v3761_v60, %s3795_s27 }
0x25ad   :  { %v3763_v62 = vpop.eup %3762 }
0x25ae   :  { %v2792_v2 = vadd.f32 1.0, %v3763_v62  ;;  %3582 = vmatpush1.bf16.msra.mxu0 %v3581_v28 }
0x25af   :  { %3583 = vmatprep.subr.bf16.mxu0 %v3794_v25 }
0x25b0   :  { %3764 = vrcp.f32 %v2792_v2 }
0x25b2   :  { %3585 = vmatpush1.bf16.msra.mxu0 %v3584_v20 }
0x25b3   :  { %3586 = vmatprep.subr.bf16.mxu0 %v3794_v25 }
0x25b6   :  { %3588 = vmatpush1.bf16.msra.mxu0 %v3587_v27 }
0x25b7   :  { %3589 = vmatprep.subr.bf16.mxu0 %v3794_v25 }
0x25ba   :  { %v4498_v3 = vpop.eup %3764  ;;  %3591 = vmatpush1.bf16.msra.mxu0 %v3590_v30 }
0x25bb   :  { %v2796_v14 = vmul.f32 %v4498_v3, %v2695_v50  ;;  %3592 = vmatprep.subr.bf16.mxu0 %v3794_v25 }
0x25be   :  { %3594 = vmatpush1.bf16.msra.mxu0 %v3593_v34 }
0x25bf   :  { %3595 = vmatprep.subr.bf16.mxu0 %v3794_v25 }
0x25c2   :  { %3597 = vmatpush1.bf16.msra.mxu0 %v3596_v39 }
0x25c3   :  { %3598 = vmatprep.subr.bf16.mxu0 %v3794_v25 }
0x25c6   :  { %3600 = vmatpush1.bf16.msra.mxu0 %v3599_v43 }
0x25c7   :  { %3601 = vmatprep.subr.bf16.mxu0 %v3794_v25 }
0x25ca   :  { %3603 = vmatpush1.bf16.msra.mxu0 %v3602_v18 }
0x25cb   :  { %3604 = vmatprep.subr.bf16.mxu0 %v3794_v25 }
0x25ce   :  { %3606 = vmatpush1.bf16.msra.mxu0 %v3605_v49 }
0x261e   :  { %v2799_v48 = vpop.permute.xlu0 %2798 }
0x261f   :  { %v2801_v45 = vmul.f32 %v4498_v3, %v2799_v48 }
0x2621   :  { %2803 = vrot.lane.b32.xlu1 %v2801_v45, %s3796_s3 }
0x2625   :  { %2276 = vrot.lane.b32.xlu1 %v2275_v23, %s3796_s3 }
0x2629   :  { %2498 = vrot.lane.b32.xlu1 %v2497_v4, %s3798_s2 }
0x2693   :  { %v2804_v5 = vpop.permute.xlu1 %2803 }
0x2694   :  { %v2806_v6 = vadd.f32 %v2804_v5, %v2796_v14 }
0x2696   :  { %3766 = vtanh.f32 %v2806_v6 }
0x2697   :  { %v2277_v63 = vpop.permute.xlu1 %2276 }
0x2698   :  { %2279 = vst.msk [vmem:[#allocation3] sm:$0x3] %vm806_vm5, %v2277_v63 }
0x269b   :  { %v2499_v54 = vpop.permute.xlu1 %2498 }
0x26a0   :  { %v3767_v12 = vpop.eup %3766 }
0x26a1   :  { %2809 = vrot.lane.b32.xlu0 %v3767_v12, %s3795_s27 }
0x26a5   :  { %2387 = vrot.lane.b32.xlu0 %v2386_v56, %s3795_s27 }
0x26a9   :  { %2710 = vrot.lane.b32.xlu0 %v2709_v17, %s3796_s3 }
0x2713   :  { %v2810_v21 = vpop.permute.xlu0 %2809 }
0x2714   :  { %v2812_v50 = vmul.f32 %v4498_v3, %v2810_v21 }
0x2716   :  { %v2820_v51 = vrot.slane %v2812_v50, %v4112_v57 }
0x2717   :  { %v2388_v52 = vpop.permute.xlu0 %2387 }
0x2718   :  { %2390 = vst.msk [vmem:[#allocation3] sm:$0x3] %vm918_vm6, %v2388_v52  ;;  %2821 = vrot.lane.b32.xlu1 %v2820_v51, %s3795_s27  ;;  %s3799_s27 = smov [#allocation4]  }
0x2719   :  { %2501 = vst.msk [vmem:[#allocation3] sm:$0x3] %vm1030_vm7, %v2499_v54  ;;  %s2948_s0 = sshll.u32 %s3799_s27, 4  ;;  %s2949_s0 = int_to_ptr.vmem [resolvable:$true] %s2948_s0 }
0x271a   :  { %2601 = vst.msk [vmem:[#allocation3] sm:$0x3] %vm1131_vm8, %v4480_v36  ;;  %s3768_s21 = scalar_lea.vmem %s2949_s0, 32  ;;  %p3773_p1 = scmp.lt.s32.totalorder %s2949_s0, %s2949_s0 }
0x271b   :  { %v2711_v55 = vpop.permute.xlu0 %2710  ;;  %p3769_p0 = scmp.ne.s32.totalorder %s2949_s0, %s3768_s21  ;;  %p3774_p2 = scmp.lt.s32.totalorder %s3768_s21, %s3768_s21 }
0x271c   :  { %2713 = vst.msk [vmem:[#allocation3 + $0x2] sm:$0x3] %vm806_vm5, %v2711_v55 }
0x271d   :  { %p3775_p3 = por %p3774_p2, %p3773_p1 }
0x271f   :  { %p3776_p4 = pnand %p3775_p3, %p3769_p0 }
0x278a   :  { %v2822_v25 = vpop.permute.xlu1 %2821 }
0x278b   :  { %2824 = vst.msk [vmem:[#allocation3 + $0x2] sm:$0x3] %vm918_vm6, %v2822_v25 }
0x2792   :  { %v3009_v58 = vld.sshfl [vmem:[#allocation3] sm:$0x33 pattern:$0x76325410] }
0x2793   :  { %v2865_v57 = vcombine.high %v3009_v58, %v3009_v58 }
0x2795   :  { %3010 = vmatprep.mubr.msk.f32.mxu0 %vm2867_vm9, %v2865_v57 }
0x2796   :  { %2935 = vmatmul.mubr.f32.vlgmr.msra.gmra.mrb[10].mxu0 %v3009_v58 }
0x2869   :  { %v2936_v31 = vpop.f32.mrb[10].mxu0 }
0x286a   :  { %v2937_v36 = vadd.f32 %v3008_v59, %v2936_v31  ;;  %v2938_v60 = vpop.f32.mrb[11].mxu0 }
0x286c   :  { %2941 = vst.msk [vmem:[#allocation4] sm:$0x3] %vm2940_vm10, %v2937_v36 }
0x286d   :  { %3779 = shalt.err (!%p3776_p4)
}
0x286e   :  { %s3780_s3 = scalar_lea.hbm %s4634_s11, 32 }
0x286f   :  { %p3781_p5 = scmp.ne.s32.totalorder %s4634_s11, %s3780_s3  ;;  %p3784_p6 = scmp.lt.u32.totalorder %s3780_s3, %s4634_s11 }
0x2871   :  { %p3786_p7 = pnand %p3784_p6, %p3781_p5 }
0x2873   :  { %3789 = shalt.err (!%p3786_p7)
}
0x2874   :  { %2951 = dma.vmem_to_hbm [thread:$0]  %s2949_s0, 32, %s4634_s11, [#allocation5]  }
0x2875   :  { %3790 = dma.done.wait [#allocation5], 32  }
0x2876   :  { %3791 = vsyncadd [#allocation5], 4294967264 }
0x2877   :  { %2955 = vsyncpa [#allocation5], 1 }

</bundles_post_ra>
